<compile_context>
chip_gen: v7x
topology: tpu7x:2x2x1
jax: 0.10.0
libtpu: 0.0.40
codegen_flags: <defaults>
</compile_context>

<pallas_src>
import math
import functools

import jax
import jax.numpy as jnp
import numpy as np
from jax.experimental import pallas as pl
from jax.experimental.pallas import tpu as pltpu

EPS = 1e-5                      # nn.LayerNorm default
_INV_SQRT2 = 0.7071067811865476


def _layernorm(v, w, b):
    mu = jnp.mean(v, axis=-1, keepdims=True)
    var = jnp.mean((v - mu) ** 2, axis=-1, keepdims=True)
    return (v - mu) * jax.lax.rsqrt(var + EPS) * w + b


def encoder_layer_kernel(
    x_ref,
    n0w_ref, n0b_ref,
    wqkv_ref, bqkv_ref,
    wo_ref, bo_ref,
    n1w_ref, n1b_ref,
    w1_ref, b1_ref, lnm_w_ref, lnm_b_ref, w2_ref, b2_ref,
    n2w_ref, n2b_ref,
    o_ref,
    ctx_ref,                                     # VMEM scratch: (S, E) bf16 attn context
    *, num_heads,
):
    x = x_ref[...]                               # (S, E), batch dim squeezed by BlockSpec
    S, E = x.shape
    dh = E // num_heads
    scale = 1.0 / math.sqrt(dh)

    # ---- norm0 (f32) ----
    h = _layernorm(x.astype(jnp.float32), n0w_ref[...], n0b_ref[...])
    hb = h.astype(jnp.bfloat16)

    # ---- fused QKV projection: one (S,E)x(E,3E) bf16 MXU matmul, f32 accumulation ----
    qkv = jnp.dot(hb, wqkv_ref[...], preferred_element_type=jnp.float32) + bqkv_ref[...]
    # Fold the 1/sqrt(dh) scale into Q once ((S,E) muls) rather than into each
    # per-head (S,S) score matrix.
    q = (qkv[:, :E] * scale).astype(jnp.bfloat16)
    k = qkv[:, E:2 * E].astype(jnp.bfloat16)
    v = qkv[:, 2 * E:].astype(jnp.bfloat16)

    # ---- multi-head self-attention (eval: attn dropout identity) ----
    # K-"transpose" handled by MXU contraction dims. Each head's context is written
    # to its lane slice of a bf16 VMEM scratch; the output projection is then a
    # single full-K (S,E)x(E,E) matmul.
    for hd in range(num_heads):                  # small static unrolled loop
        sl = slice(hd * dh, (hd + 1) * dh)
        qh, kh, vh = q[:, sl], k[:, sl], v[:, sl]
        s = jax.lax.dot_general(
            qh, kh,
            dimension_numbers=(((1,), (1,)), ((), ())),   # q @ k^T without explicit .T
            preferred_element_type=jnp.float32)
        s = s - jnp.max(s, axis=-1, keepdims=True)
        p = jnp.exp(s)
        p = p * pl.reciprocal(jnp.sum(p, axis=-1, keepdims=True), approx=True)
        ctx = jnp.dot(p.astype(jnp.bfloat16), vh, preferred_element_type=jnp.float32)
        ctx_ref[:, sl] = ctx.astype(jnp.bfloat16)

    attn = jnp.dot(ctx_ref[...], wo_ref[...],
                   preferred_element_type=jnp.float32) + bo_ref[...]

    # ---- residual + norm1 (self.dropout / stochastic_depth are identity in eval) ----
    x1 = _layernorm(h + attn, n1w_ref[...], n1b_ref[...])

    # ---- MLP: Linear -> LayerNorm -> GELU(exact erf) -> Linear ----
    m = jnp.dot(x1.astype(jnp.bfloat16), w1_ref[...],
                preferred_element_type=jnp.float32) + b1_ref[...]
    m = _layernorm(m, lnm_w_ref[...], lnm_b_ref[...])
    m = 0.5 * m * (1.0 + jax.lax.erf(m * _INV_SQRT2))
    m = jnp.dot(m.astype(jnp.bfloat16), w2_ref[...],
                preferred_element_type=jnp.float32) + b2_ref[...]

    # ---- residual + norm2 ----
    out = _layernorm(x1 + m, n2w_ref[...], n2b_ref[...])
    o_ref[...] = out.astype(o_ref.dtype)


def transformer_encoder_layer(x, params, num_heads):
    """x: (B, S, E) float32. params: ordered tuple (see init_params)."""
    B, S, E = x.shape
    H4 = params[8].shape[1]                       # mlp hidden width (w1 is (E, 4E))

    def param_spec(p):
        nd = p.ndim
        return pl.BlockSpec(p.shape, lambda b, _nd=nd: (0,) * _nd)

    in_specs = ([pl.BlockSpec((None, S, E), lambda b: (b, 0, 0))]
                + [param_spec(p) for p in params])
    out_specs = pl.BlockSpec((None, S, E), lambda b: (b, 0, 0))

    flops = B * (2 * S * E * 3 * E                # fused QKV projection
                 + 4 * S * S * E                  # QK^T + PV over all heads
                 + 2 * S * E * E                  # attention output projection
                 + 4 * S * E * H4)                # MLP linear1 + linear2
    transcendentals = B * (num_heads * S * S + S * H4)
    bytes_accessed = int(2 * x.size * x.dtype.itemsize
                         + sum(int(p.size) * p.dtype.itemsize for p in params))

    f = pl.pallas_call(
        functools.partial(encoder_layer_kernel, num_heads=num_heads),
        out_shape=jax.ShapeDtypeStruct((B, S, E), x.dtype),
        grid_spec=pltpu.PrefetchScalarGridSpec(
            num_scalar_prefetch=0,
            grid=(B,),
            in_specs=in_specs,
            out_specs=out_specs,
            scratch_shapes=[pltpu.VMEM((S, E), jnp.bfloat16)],
        ),
        compiler_params=pltpu.CompilerParams(
            dimension_semantics=("parallel",),
            vmem_limit_bytes=64 * 1024 * 1024,
        ),
        cost_estimate=pl.CostEstimate(
            flops=flops,
            transcendentals=transcendentals,
            bytes_accessed=bytes_accessed,
        ),
    )
    return f(x, *params)


def init_params(key, embed_dim, mlp_ratio=4.0):
    """Deterministic synthetic parameters, same shapes as the PyTorch module.

    Matmul weights are pre-transposed (tokens @ W) and stored in bf16; biases and
    LayerNorm affine params stay f32 and are reshaped to (1, N) for clean TPU layout.
    """
    E = embed_dim
    H4 = int(E * mlp_ratio)
    ks = jax.random.split(key, 8)

    in_proj_w = 0.02 * jax.random.normal(ks[0], (3 * E, E), jnp.float32)   # [Wq;Wk;Wv]
    in_proj_b = 0.01 * jax.random.normal(ks[1], (3 * E,), jnp.float32)
    out_proj_w = 0.02 * jax.random.normal(ks[2], (E, E), jnp.float32)
    out_proj_b = 0.01 * jax.random.normal(ks[3], (E,), jnp.float32)
    mlp_w1 = 0.02 * jax.random.normal(ks[4], (H4, E), jnp.float32)
    mlp_b1 = 0.01 * jax.random.normal(ks[5], (H4,), jnp.float32)
    mlp_w2 = 0.02 * jax.random.normal(ks[6], (E, H4), jnp.float32)
    mlp_b2 = 0.01 * jax.random.normal(ks[7], (E,), jnp.float32)

    ones_e, zeros_e = jnp.ones((E,), jnp.float32), jnp.zeros((E,), jnp.float32)
    ones_h, zeros_h = jnp.ones((H4,), jnp.float32), jnp.zeros((H4,), jnp.float32)

    r1 = lambda a: a.reshape(1, -1)
    bf = lambda a: a.astype(jnp.bfloat16)

    w_qkv = bf(in_proj_w.T)        # (E, 3E), columns ordered [q | k | v]
    b_qkv = r1(in_proj_b)          # (1, 3E)
    wo = bf(out_proj_w.T)          # (E, E), rows = concatenated-head dim
    bo = r1(out_proj_b)
    w1 = bf(mlp_w1.T)              # (E, 4E)
    b1 = r1(mlp_b1)
    w2 = bf(mlp_w2.T)              # (4E, E)
    b2 = r1(mlp_b2)

    params = (
        r1(ones_e), r1(zeros_e),                 # norm0 w, b
        w_qkv, b_qkv,                            # fused qkv projection
        wo, bo,                                  # attn out proj
        r1(ones_e), r1(zeros_e),                 # norm1 w, b
        w1, b1,                                  # mlp linear1
        r1(ones_h), r1(zeros_h),                 # mlp LayerNorm(4E)
        w2, b2,                                  # mlp linear2
        r1(ones_e), r1(zeros_e),                 # norm2 w, b
    )
    return params


def reference_forward(x, params, num_heads):
    """Plain-JAX f32 reference (eval mode) for correctness checking."""
    (n0w, n0b, wqkv, bqkv, wo, bo, n1w, n1b,
     w1, b1, lnw, lnb, w2, b2, n2w, n2b) = params
    wqkv = wqkv.astype(jnp.float32)
    wo = wo.astype(jnp.float32)
    w1 = w1.astype(jnp.float32)
    w2 = w2.astype(jnp.float32)

    B, S, E = x.shape
    dh = E // num_heads
    scale = 1.0 / math.sqrt(dh)

    def ln(v, w, b):
        mu = v.mean(-1, keepdims=True)
        var = ((v - mu) ** 2).mean(-1, keepdims=True)
        return (v - mu) / jnp.sqrt(var + EPS) * w + b

    h = ln(x, n0w, n0b)
    qkv = h @ wqkv + bqkv
    q, k, v = jnp.split(qkv, 3, axis=-1)
    q = q.reshape(B, S, num_heads, dh).transpose(0, 2, 1, 3)
    k = k.reshape(B, S, num_heads, dh).transpose(0, 2, 1, 3)
    v = v.reshape(B, S, num_heads, dh).transpose(0, 2, 1, 3)
    s = jnp.einsum("bhqd,bhkd->bhqk", q, k) * scale
    p = jax.nn.softmax(s, axis=-1)
    attn = jnp.einsum("bhqk,bhkd->bhqd", p, v).transpose(0, 2, 1, 3).reshape(B, S, E)
    attn = attn @ wo + bo
    x1 = ln(h + attn, n1w, n1b)
    m = ln(x1 @ w1 + b1, lnw, lnb)
    m = jax.nn.gelu(m, approximate=False)
    m = m @ w2 + b2
    return ln(x1 + m, n2w, n2b)


if __name__ == "__main__":
    B, S, E, H = 2, 8, 32, 4

    key = jax.random.PRNGKey(0)
    kx, kp = jax.random.split(key)
    x = jax.random.normal(kx, (B, S, E), jnp.float32)
    params = init_params(kp, E, mlp_ratio=4.0)

    out = jax.block_until_ready(transformer_encoder_layer(x, params, num_heads=H))
    ref = jax.block_until_ready(reference_forward(x, params, H))

    # bf16 matmul operands (f32 accumulation) => slightly looser tolerance than pure f32.
    np.testing.assert_allclose(np.asarray(out), np.asarray(ref), rtol=3e-2, atol=3e-2)

    print("KERNEL_OK")
</pallas_src>

<mosaic_0001>
module attributes {stable_mosaic.version = 11 : i64} {
  func.func @encoder_layer_kernel(%arg0: i32, %arg1: memref<1x8x32xf32, #tpu.memory_space<vmem>>, %arg2: memref<1x32xf32, #tpu.memory_space<vmem>>, %arg3: memref<1x32xf32, #tpu.memory_space<vmem>>, %arg4: memref<32x96xbf16, #tpu.memory_space<vmem>>, %arg5: memref<1x96xf32, #tpu.memory_space<vmem>>, %arg6: memref<32x32xbf16, #tpu.memory_space<vmem>>, %arg7: memref<1x32xf32, #tpu.memory_space<vmem>>, %arg8: memref<1x32xf32, #tpu.memory_space<vmem>>, %arg9: memref<1x32xf32, #tpu.memory_space<vmem>>, %arg10: memref<32x128xbf16, #tpu.memory_space<vmem>>, %arg11: memref<1x128xf32, #tpu.memory_space<vmem>>, %arg12: memref<1x128xf32, #tpu.memory_space<vmem>>, %arg13: memref<1x128xf32, #tpu.memory_space<vmem>>, %arg14: memref<128x32xbf16, #tpu.memory_space<vmem>>, %arg15: memref<1x32xf32, #tpu.memory_space<vmem>>, %arg16: memref<1x32xf32, #tpu.memory_space<vmem>>, %arg17: memref<1x32xf32, #tpu.memory_space<vmem>>, %arg18: memref<1x8x32xf32, #tpu.memory_space<vmem>>, %arg19: memref<8x32xbf16, #tpu.memory_space<vmem>>) attributes {dimension_semantics = [#tpu.dimension_semantics<parallel>], iteration_bounds = array<i64: 2>, scalar_prefetch = 0 : i64, scratch_operands = 1 : i64, tpu.core_type = #tpu.core_type<tc>, window_params = [{transform_indices = @transform_0, window_bounds = array<i64: 1, 8, 32>}, {pipeline_mode = #tpu.pipeline_mode<synchronous>, transform_indices = @transform_1, window_bounds = array<i64: 1, 32>}, {pipeline_mode = #tpu.pipeline_mode<synchronous>, transform_indices = @transform_2, window_bounds = array<i64: 1, 32>}, {pipeline_mode = #tpu.pipeline_mode<synchronous>, transform_indices = @transform_3, window_bounds = array<i64: 32, 96>}, {pipeline_mode = #tpu.pipeline_mode<synchronous>, transform_indices = @transform_4, window_bounds = array<i64: 1, 96>}, {pipeline_mode = #tpu.pipeline_mode<synchronous>, transform_indices = @transform_5, window_bounds = array<i64: 32, 32>}, {pipeline_mode = #tpu.pipeline_mode<synchronous>, transform_indices = @transform_6, window_bounds = array<i64: 1, 32>}, {pipeline_mode = #tpu.pipeline_mode<synchronous>, transform_indices = @transform_7, window_bounds = array<i64: 1, 32>}, {pipeline_mode = #tpu.pipeline_mode<synchronous>, transform_indices = @transform_8, window_bounds = array<i64: 1, 32>}, {pipeline_mode = #tpu.pipeline_mode<synchronous>, transform_indices = @transform_9, window_bounds = array<i64: 32, 128>}, {pipeline_mode = #tpu.pipeline_mode<synchronous>, transform_indices = @transform_10, window_bounds = array<i64: 1, 128>}, {pipeline_mode = #tpu.pipeline_mode<synchronous>, transform_indices = @transform_11, window_bounds = array<i64: 1, 128>}, {pipeline_mode = #tpu.pipeline_mode<synchronous>, transform_indices = @transform_12, window_bounds = array<i64: 1, 128>}, {pipeline_mode = #tpu.pipeline_mode<synchronous>, transform_indices = @transform_13, window_bounds = array<i64: 128, 32>}, {pipeline_mode = #tpu.pipeline_mode<synchronous>, transform_indices = @transform_14, window_bounds = array<i64: 1, 32>}, {pipeline_mode = #tpu.pipeline_mode<synchronous>, transform_indices = @transform_15, window_bounds = array<i64: 1, 32>}, {pipeline_mode = #tpu.pipeline_mode<synchronous>, transform_indices = @transform_16, window_bounds = array<i64: 1, 32>}, {transform_indices = @transform_17, window_bounds = array<i64: 1, 8, 32>}]} {
    %c0 = arith.constant 0 : index
    %c0_0 = arith.constant 0 : index
    %c0_1 = arith.constant 0 : index
    %0 = vector.load %arg1[%c0, %c0_0, %c0_1] : memref<1x8x32xf32, #tpu.memory_space<vmem>>, vector<1x8x32xf32>
    %1 = vector.shape_cast %0 : vector<1x8x32xf32> to vector<8x32xf32>
    %c0_2 = arith.constant 0 : index
    %c0_3 = arith.constant 0 : index
    %2 = vector.load %arg2[%c0_2, %c0_3] : memref<1x32xf32, #tpu.memory_space<vmem>>, vector<1x32xf32>
    %c0_4 = arith.constant 0 : index
    %c0_5 = arith.constant 0 : index
    %3 = vector.load %arg3[%c0_4, %c0_5] : memref<1x32xf32, #tpu.memory_space<vmem>>, vector<1x32xf32>
    %cst = arith.constant dense<0.000000e+00> : vector<8xf32>
    %4 = vector.multi_reduction <add>, %1, %cst [1] : vector<8x32xf32> to vector<8xf32>
    %5 = vector.shape_cast %4 : vector<8xf32> to vector<8x1xf32>
    %cst_6 = arith.constant 3.200000e+01 : f32
    %6 = vector.broadcast %cst_6 : f32 to vector<8x1xf32>
    %7 = arith.divf %5, %6 : vector<8x1xf32>
    %8 = vector.broadcast %7 : vector<8x1xf32> to vector<8x32xf32>
    %9 = arith.subf %1, %8 : vector<8x32xf32>
    %10 = arith.mulf %9, %9 : vector<8x32xf32>
    %cst_7 = arith.constant dense<0.000000e+00> : vector<8xf32>
    %11 = vector.multi_reduction <add>, %10, %cst_7 [1] : vector<8x32xf32> to vector<8xf32>
    %12 = vector.shape_cast %11 : vector<8xf32> to vector<8x1xf32>
    %cst_8 = arith.constant 3.200000e+01 : f32
    %13 = vector.broadcast %cst_8 : f32 to vector<8x1xf32>
    %14 = arith.divf %12, %13 : vector<8x1xf32>
    %15 = vector.broadcast %7 : vector<8x1xf32> to vector<8x32xf32>
    %16 = arith.subf %1, %15 : vector<8x32xf32>
    %cst_9 = arith.constant 9.99999974E-6 : f32
    %17 = vector.broadcast %cst_9 : f32 to vector<8x1xf32>
    %18 = arith.addf %14, %17 : vector<8x1xf32>
    %19 = math.rsqrt %18 : vector<8x1xf32>
    %20 = vector.broadcast %19 : vector<8x1xf32> to vector<8x32xf32>
    %21 = arith.mulf %16, %20 : vector<8x32xf32>
    %22 = vector.broadcast %2 : vector<1x32xf32> to vector<8x32xf32>
    %23 = arith.mulf %21, %22 : vector<8x32xf32>
    %24 = vector.broadcast %3 : vector<1x32xf32> to vector<8x32xf32>
    %25 = arith.addf %23, %24 : vector<8x32xf32>
    %26 = arith.truncf %25 : vector<8x32xf32> to vector<8x32xbf16>
    %c0_10 = arith.constant 0 : index
    %c0_11 = arith.constant 0 : index
    %27 = vector.load %arg4[%c0_10, %c0_11] : memref<32x96xbf16, #tpu.memory_space<vmem>>, vector<32x96xbf16>
    %cst_12 = arith.constant dense<0.000000e+00> : vector<8x96xf32>
    %28 = tpu.matmul %26, %27, %cst_12 {dimension_numbers = #tpu.dot_dimension_numbers<[1], [0], [0], [1], [0, 0, 1, 1], [], []>} : vector<8x32xbf16>, vector<32x96xbf16>, vector<8x96xf32> -> vector<8x96xf32>
    %c0_13 = arith.constant 0 : index
    %c0_14 = arith.constant 0 : index
    %29 = vector.load %arg5[%c0_13, %c0_14] : memref<1x96xf32, #tpu.memory_space<vmem>>, vector<1x96xf32>
    %30 = vector.broadcast %29 : vector<1x96xf32> to vector<8x96xf32>
    %31 = arith.addf %28, %30 : vector<8x96xf32>
    %32 = vector.extract_strided_slice %31 {offsets = [0, 0], sizes = [8, 32], strides = [1, 1]} : vector<8x96xf32> to vector<8x32xf32>
    %cst_15 = arith.constant 0.353553385 : f32
    %33 = vector.broadcast %cst_15 : f32 to vector<8x32xf32>
    %34 = arith.mulf %32, %33 : vector<8x32xf32>
    %35 = arith.truncf %34 : vector<8x32xf32> to vector<8x32xbf16>
    %36 = vector.extract_strided_slice %31 {offsets = [0, 32], sizes = [8, 32], strides = [1, 1]} : vector<8x96xf32> to vector<8x32xf32>
    %37 = arith.truncf %36 : vector<8x32xf32> to vector<8x32xbf16>
    %38 = vector.extract_strided_slice %31 {offsets = [0, 64], sizes = [8, 32], strides = [1, 1]} : vector<8x96xf32> to vector<8x32xf32>
    %39 = arith.truncf %38 : vector<8x32xf32> to vector<8x32xbf16>
    %40 = vector.extract_strided_slice %35 {offsets = [0, 0], sizes = [8, 8], strides = [1, 1]} : vector<8x32xbf16> to vector<8x8xbf16>
    %41 = vector.extract_strided_slice %37 {offsets = [0, 0], sizes = [8, 8], strides = [1, 1]} : vector<8x32xbf16> to vector<8x8xbf16>
    %42 = vector.extract_strided_slice %39 {offsets = [0, 0], sizes = [8, 8], strides = [1, 1]} : vector<8x32xbf16> to vector<8x8xbf16>
    %cst_16 = arith.constant dense<0.000000e+00> : vector<8x8xf32>
    %43 = tpu.matmul %40, %41, %cst_16 {dimension_numbers = #tpu.dot_dimension_numbers<[1], [1], [0], [0], [0, 0, 1, 0], [], []>} : vector<8x8xbf16>, vector<8x8xbf16>, vector<8x8xf32> -> vector<8x8xf32>
    %cst_17 = arith.constant dense<0xFF800000> : vector<8xf32>
    %44 = vector.multi_reduction <maximumf>, %43, %cst_17 [1] : vector<8x8xf32> to vector<8xf32>
    %45 = vector.shape_cast %44 : vector<8xf32> to vector<8x1xf32>
    %46 = vector.broadcast %45 : vector<8x1xf32> to vector<8x8xf32>
    %47 = arith.subf %43, %46 : vector<8x8xf32>
    %48 = math.exp %47 : vector<8x8xf32>
    %cst_18 = arith.constant dense<0.000000e+00> : vector<8xf32>
    %49 = vector.multi_reduction <add>, %48, %cst_18 [1] : vector<8x8xf32> to vector<8xf32>
    %50 = vector.shape_cast %49 : vector<8xf32> to vector<8x1xf32>
    %51 = tpu.reciprocal %50 {approx = true} : vector<8x1xf32> -> vector<8x1xf32>
    %52 = vector.broadcast %51 : vector<8x1xf32> to vector<8x8xf32>
    %53 = arith.mulf %48, %52 : vector<8x8xf32>
    %54 = arith.truncf %53 : vector<8x8xf32> to vector<8x8xbf16>
    %cst_19 = arith.constant dense<0.000000e+00> : vector<8x8xf32>
    %55 = tpu.matmul %54, %42, %cst_19 {dimension_numbers = #tpu.dot_dimension_numbers<[1], [0], [0], [1], [0, 0, 1, 1], [], []>} : vector<8x8xbf16>, vector<8x8xbf16>, vector<8x8xf32> -> vector<8x8xf32>
    %56 = arith.truncf %55 : vector<8x8xf32> to vector<8x8xbf16>
    %c0_20 = arith.constant 0 : index
    %c0_21 = arith.constant 0 : index
    %57 = vector.load %arg19[%c0_20, %c0_21] : memref<8x32xbf16, #tpu.memory_space<vmem>>, vector<8x8xbf16>
    tpu.vector_store %arg19[%c0_20, %c0_21], %56 {strides = array<i32>} : memref<8x32xbf16, #tpu.memory_space<vmem>>, vector<8x8xbf16>,
    %58 = vector.extract_strided_slice %35 {offsets = [0, 8], sizes = [8, 8], strides = [1, 1]} : vector<8x32xbf16> to vector<8x8xbf16>
    %59 = vector.extract_strided_slice %37 {offsets = [0, 8], sizes = [8, 8], strides = [1, 1]} : vector<8x32xbf16> to vector<8x8xbf16>
    %60 = vector.extract_strided_slice %39 {offsets = [0, 8], sizes = [8, 8], strides = [1, 1]} : vector<8x32xbf16> to vector<8x8xbf16>
    %cst_22 = arith.constant dense<0.000000e+00> : vector<8x8xf32>
    %61 = tpu.matmul %58, %59, %cst_22 {dimension_numbers = #tpu.dot_dimension_numbers<[1], [1], [0], [0], [0, 0, 1, 0], [], []>} : vector<8x8xbf16>, vector<8x8xbf16>, vector<8x8xf32> -> vector<8x8xf32>
    %cst_23 = arith.constant dense<0xFF800000> : vector<8xf32>
    %62 = vector.multi_reduction <maximumf>, %61, %cst_23 [1] : vector<8x8xf32> to vector<8xf32>
    %63 = vector.shape_cast %62 : vector<8xf32> to vector<8x1xf32>
    %64 = vector.broadcast %63 : vector<8x1xf32> to vector<8x8xf32>
    %65 = arith.subf %61, %64 : vector<8x8xf32>
    %66 = math.exp %65 : vector<8x8xf32>
    %cst_24 = arith.constant dense<0.000000e+00> : vector<8xf32>
    %67 = vector.multi_reduction <add>, %66, %cst_24 [1] : vector<8x8xf32> to vector<8xf32>
    %68 = vector.shape_cast %67 : vector<8xf32> to vector<8x1xf32>
    %69 = tpu.reciprocal %68 {approx = true} : vector<8x1xf32> -> vector<8x1xf32>
    %70 = vector.broadcast %69 : vector<8x1xf32> to vector<8x8xf32>
    %71 = arith.mulf %66, %70 : vector<8x8xf32>
    %72 = arith.truncf %71 : vector<8x8xf32> to vector<8x8xbf16>
    %cst_25 = arith.constant dense<0.000000e+00> : vector<8x8xf32>
    %73 = tpu.matmul %72, %60, %cst_25 {dimension_numbers = #tpu.dot_dimension_numbers<[1], [0], [0], [1], [0, 0, 1, 1], [], []>} : vector<8x8xbf16>, vector<8x8xbf16>, vector<8x8xf32> -> vector<8x8xf32>
    %74 = arith.truncf %73 : vector<8x8xf32> to vector<8x8xbf16>
    %c0_26 = arith.constant 0 : index
    %c8 = arith.constant 8 : index
    %75 = vector.load %arg19[%c0_26, %c8] : memref<8x32xbf16, #tpu.memory_space<vmem>>, vector<8x8xbf16>
    tpu.vector_store %arg19[%c0_26, %c8], %74 {strides = array<i32>} : memref<8x32xbf16, #tpu.memory_space<vmem>>, vector<8x8xbf16>,
    %76 = vector.extract_strided_slice %35 {offsets = [0, 16], sizes = [8, 8], strides = [1, 1]} : vector<8x32xbf16> to vector<8x8xbf16>
    %77 = vector.extract_strided_slice %37 {offsets = [0, 16], sizes = [8, 8], strides = [1, 1]} : vector<8x32xbf16> to vector<8x8xbf16>
    %78 = vector.extract_strided_slice %39 {offsets = [0, 16], sizes = [8, 8], strides = [1, 1]} : vector<8x32xbf16> to vector<8x8xbf16>
    %cst_27 = arith.constant dense<0.000000e+00> : vector<8x8xf32>
    %79 = tpu.matmul %76, %77, %cst_27 {dimension_numbers = #tpu.dot_dimension_numbers<[1], [1], [0], [0], [0, 0, 1, 0], [], []>} : vector<8x8xbf16>, vector<8x8xbf16>, vector<8x8xf32> -> vector<8x8xf32>
    %cst_28 = arith.constant dense<0xFF800000> : vector<8xf32>
    %80 = vector.multi_reduction <maximumf>, %79, %cst_28 [1] : vector<8x8xf32> to vector<8xf32>
    %81 = vector.shape_cast %80 : vector<8xf32> to vector<8x1xf32>
    %82 = vector.broadcast %81 : vector<8x1xf32> to vector<8x8xf32>
    %83 = arith.subf %79, %82 : vector<8x8xf32>
    %84 = math.exp %83 : vector<8x8xf32>
    %cst_29 = arith.constant dense<0.000000e+00> : vector<8xf32>
    %85 = vector.multi_reduction <add>, %84, %cst_29 [1] : vector<8x8xf32> to vector<8xf32>
    %86 = vector.shape_cast %85 : vector<8xf32> to vector<8x1xf32>
    %87 = tpu.reciprocal %86 {approx = true} : vector<8x1xf32> -> vector<8x1xf32>
    %88 = vector.broadcast %87 : vector<8x1xf32> to vector<8x8xf32>
    %89 = arith.mulf %84, %88 : vector<8x8xf32>
    %90 = arith.truncf %89 : vector<8x8xf32> to vector<8x8xbf16>
    %cst_30 = arith.constant dense<0.000000e+00> : vector<8x8xf32>
    %91 = tpu.matmul %90, %78, %cst_30 {dimension_numbers = #tpu.dot_dimension_numbers<[1], [0], [0], [1], [0, 0, 1, 1], [], []>} : vector<8x8xbf16>, vector<8x8xbf16>, vector<8x8xf32> -> vector<8x8xf32>
    %92 = arith.truncf %91 : vector<8x8xf32> to vector<8x8xbf16>
    %c0_31 = arith.constant 0 : index
    %c16 = arith.constant 16 : index
    %93 = vector.load %arg19[%c0_31, %c16] : memref<8x32xbf16, #tpu.memory_space<vmem>>, vector<8x8xbf16>
    tpu.vector_store %arg19[%c0_31, %c16], %92 {strides = array<i32>} : memref<8x32xbf16, #tpu.memory_space<vmem>>, vector<8x8xbf16>,
    %94 = vector.extract_strided_slice %35 {offsets = [0, 24], sizes = [8, 8], strides = [1, 1]} : vector<8x32xbf16> to vector<8x8xbf16>
    %95 = vector.extract_strided_slice %37 {offsets = [0, 24], sizes = [8, 8], strides = [1, 1]} : vector<8x32xbf16> to vector<8x8xbf16>
    %96 = vector.extract_strided_slice %39 {offsets = [0, 24], sizes = [8, 8], strides = [1, 1]} : vector<8x32xbf16> to vector<8x8xbf16>
    %cst_32 = arith.constant dense<0.000000e+00> : vector<8x8xf32>
    %97 = tpu.matmul %94, %95, %cst_32 {dimension_numbers = #tpu.dot_dimension_numbers<[1], [1], [0], [0], [0, 0, 1, 0], [], []>} : vector<8x8xbf16>, vector<8x8xbf16>, vector<8x8xf32> -> vector<8x8xf32>
    %cst_33 = arith.constant dense<0xFF800000> : vector<8xf32>
    %98 = vector.multi_reduction <maximumf>, %97, %cst_33 [1] : vector<8x8xf32> to vector<8xf32>
    %99 = vector.shape_cast %98 : vector<8xf32> to vector<8x1xf32>
    %100 = vector.broadcast %99 : vector<8x1xf32> to vector<8x8xf32>
    %101 = arith.subf %97, %100 : vector<8x8xf32>
    %102 = math.exp %101 : vector<8x8xf32>
    %cst_34 = arith.constant dense<0.000000e+00> : vector<8xf32>
    %103 = vector.multi_reduction <add>, %102, %cst_34 [1] : vector<8x8xf32> to vector<8xf32>
    %104 = vector.shape_cast %103 : vector<8xf32> to vector<8x1xf32>
    %105 = tpu.reciprocal %104 {approx = true} : vector<8x1xf32> -> vector<8x1xf32>
    %106 = vector.broadcast %105 : vector<8x1xf32> to vector<8x8xf32>
    %107 = arith.mulf %102, %106 : vector<8x8xf32>
    %108 = arith.truncf %107 : vector<8x8xf32> to vector<8x8xbf16>
    %cst_35 = arith.constant dense<0.000000e+00> : vector<8x8xf32>
    %109 = tpu.matmul %108, %96, %cst_35 {dimension_numbers = #tpu.dot_dimension_numbers<[1], [0], [0], [1], [0, 0, 1, 1], [], []>} : vector<8x8xbf16>, vector<8x8xbf16>, vector<8x8xf32> -> vector<8x8xf32>
    %110 = arith.truncf %109 : vector<8x8xf32> to vector<8x8xbf16>
    %c0_36 = arith.constant 0 : index
    %c24 = arith.constant 24 : index
    %111 = vector.load %arg19[%c0_36, %c24] : memref<8x32xbf16, #tpu.memory_space<vmem>>, vector<8x8xbf16>
    tpu.vector_store %arg19[%c0_36, %c24], %110 {strides = array<i32>} : memref<8x32xbf16, #tpu.memory_space<vmem>>, vector<8x8xbf16>,
    %c0_37 = arith.constant 0 : index
    %c0_38 = arith.constant 0 : index
    %112 = vector.load %arg19[%c0_37, %c0_38] : memref<8x32xbf16, #tpu.memory_space<vmem>>, vector<8x32xbf16>
    %c0_39 = arith.constant 0 : index
    %c0_40 = arith.constant 0 : index
    %113 = vector.load %arg6[%c0_39, %c0_40] : memref<32x32xbf16, #tpu.memory_space<vmem>>, vector<32x32xbf16>
    %cst_41 = arith.constant dense<0.000000e+00> : vector<8x32xf32>
    %114 = tpu.matmul %112, %113, %cst_41 {dimension_numbers = #tpu.dot_dimension_numbers<[1], [0], [0], [1], [0, 0, 1, 1], [], []>} : vector<8x32xbf16>, vector<32x32xbf16>, vector<8x32xf32> -> vector<8x32xf32>
    %c0_42 = arith.constant 0 : index
    %c0_43 = arith.constant 0 : index
    %115 = vector.load %arg7[%c0_42, %c0_43] : memref<1x32xf32, #tpu.memory_space<vmem>>, vector<1x32xf32>
    %116 = vector.broadcast %115 : vector<1x32xf32> to vector<8x32xf32>
    %117 = arith.addf %114, %116 : vector<8x32xf32>
    %118 = arith.addf %25, %117 : vector<8x32xf32>
    %c0_44 = arith.constant 0 : index
    %c0_45 = arith.constant 0 : index
    %119 = vector.load %arg8[%c0_44, %c0_45] : memref<1x32xf32, #tpu.memory_space<vmem>>, vector<1x32xf32>
    %c0_46 = arith.constant 0 : index
    %c0_47 = arith.constant 0 : index
    %120 = vector.load %arg9[%c0_46, %c0_47] : memref<1x32xf32, #tpu.memory_space<vmem>>, vector<1x32xf32>
    %cst_48 = arith.constant dense<0.000000e+00> : vector<8xf32>
    %121 = vector.multi_reduction <add>, %118, %cst_48 [1] : vector<8x32xf32> to vector<8xf32>
    %122 = vector.shape_cast %121 : vector<8xf32> to vector<8x1xf32>
    %cst_49 = arith.constant 3.200000e+01 : f32
    %123 = vector.broadcast %cst_49 : f32 to vector<8x1xf32>
    %124 = arith.divf %122, %123 : vector<8x1xf32>
    %125 = vector.broadcast %124 : vector<8x1xf32> to vector<8x32xf32>
    %126 = arith.subf %118, %125 : vector<8x32xf32>
    %127 = arith.mulf %126, %126 : vector<8x32xf32>
    %cst_50 = arith.constant dense<0.000000e+00> : vector<8xf32>
    %128 = vector.multi_reduction <add>, %127, %cst_50 [1] : vector<8x32xf32> to vector<8xf32>
    %129 = vector.shape_cast %128 : vector<8xf32> to vector<8x1xf32>
    %cst_51 = arith.constant 3.200000e+01 : f32
    %130 = vector.broadcast %cst_51 : f32 to vector<8x1xf32>
    %131 = arith.divf %129, %130 : vector<8x1xf32>
    %132 = vector.broadcast %124 : vector<8x1xf32> to vector<8x32xf32>
    %133 = arith.subf %118, %132 : vector<8x32xf32>
    %cst_52 = arith.constant 9.99999974E-6 : f32
    %134 = vector.broadcast %cst_52 : f32 to vector<8x1xf32>
    %135 = arith.addf %131, %134 : vector<8x1xf32>
    %136 = math.rsqrt %135 : vector<8x1xf32>
    %137 = vector.broadcast %136 : vector<8x1xf32> to vector<8x32xf32>
    %138 = arith.mulf %133, %137 : vector<8x32xf32>
    %139 = vector.broadcast %119 : vector<1x32xf32> to vector<8x32xf32>
    %140 = arith.mulf %138, %139 : vector<8x32xf32>
    %141 = vector.broadcast %120 : vector<1x32xf32> to vector<8x32xf32>
    %142 = arith.addf %140, %141 : vector<8x32xf32>
    %143 = arith.truncf %142 : vector<8x32xf32> to vector<8x32xbf16>
    %c0_53 = arith.constant 0 : index
    %c0_54 = arith.constant 0 : index
    %144 = vector.load %arg10[%c0_53, %c0_54] : memref<32x128xbf16, #tpu.memory_space<vmem>>, vector<32x128xbf16>
    %cst_55 = arith.constant dense<0.000000e+00> : vector<8x128xf32>
    %145 = tpu.matmul %143, %144, %cst_55 {dimension_numbers = #tpu.dot_dimension_numbers<[1], [0], [0], [1], [0, 0, 1, 1], [], []>} : vector<8x32xbf16>, vector<32x128xbf16>, vector<8x128xf32> -> vector<8x128xf32>
    %c0_56 = arith.constant 0 : index
    %c0_57 = arith.constant 0 : index
    %146 = vector.load %arg11[%c0_56, %c0_57] : memref<1x128xf32, #tpu.memory_space<vmem>>, vector<1x128xf32>
    %147 = vector.broadcast %146 : vector<1x128xf32> to vector<8x128xf32>
    %148 = arith.addf %145, %147 : vector<8x128xf32>
    %c0_58 = arith.constant 0 : index
    %c0_59 = arith.constant 0 : index
    %149 = vector.load %arg12[%c0_58, %c0_59] : memref<1x128xf32, #tpu.memory_space<vmem>>, vector<1x128xf32>
    %c0_60 = arith.constant 0 : index
    %c0_61 = arith.constant 0 : index
    %150 = vector.load %arg13[%c0_60, %c0_61] : memref<1x128xf32, #tpu.memory_space<vmem>>, vector<1x128xf32>
    %cst_62 = arith.constant dense<0.000000e+00> : vector<8xf32>
    %151 = vector.multi_reduction <add>, %148, %cst_62 [1] : vector<8x128xf32> to vector<8xf32>
    %152 = vector.shape_cast %151 : vector<8xf32> to vector<8x1xf32>
    %cst_63 = arith.constant 1.280000e+02 : f32
    %153 = vector.broadcast %cst_63 : f32 to vector<8x1xf32>
    %154 = arith.divf %152, %153 : vector<8x1xf32>
    %155 = vector.broadcast %154 : vector<8x1xf32> to vector<8x128xf32>
    %156 = arith.subf %148, %155 : vector<8x128xf32>
    %157 = arith.mulf %156, %156 : vector<8x128xf32>
    %cst_64 = arith.constant dense<0.000000e+00> : vector<8xf32>
    %158 = vector.multi_reduction <add>, %157, %cst_64 [1] : vector<8x128xf32> to vector<8xf32>
    %159 = vector.shape_cast %158 : vector<8xf32> to vector<8x1xf32>
    %cst_65 = arith.constant 1.280000e+02 : f32
    %160 = vector.broadcast %cst_65 : f32 to vector<8x1xf32>
    %161 = arith.divf %159, %160 : vector<8x1xf32>
    %162 = vector.broadcast %154 : vector<8x1xf32> to vector<8x128xf32>
    %163 = arith.subf %148, %162 : vector<8x128xf32>
    %cst_66 = arith.constant 9.99999974E-6 : f32
    %164 = vector.broadcast %cst_66 : f32 to vector<8x1xf32>
    %165 = arith.addf %161, %164 : vector<8x1xf32>
    %166 = math.rsqrt %165 : vector<8x1xf32>
    %167 = vector.broadcast %166 : vector<8x1xf32> to vector<8x128xf32>
    %168 = arith.mulf %163, %167 : vector<8x128xf32>
    %169 = vector.broadcast %149 : vector<1x128xf32> to vector<8x128xf32>
    %170 = arith.mulf %168, %169 : vector<8x128xf32>
    %171 = vector.broadcast %150 : vector<1x128xf32> to vector<8x128xf32>
    %172 = arith.addf %170, %171 : vector<8x128xf32>
    %cst_67 = arith.constant 5.000000e-01 : f32
    %173 = vector.broadcast %cst_67 : f32 to vector<8x128xf32>
    %174 = arith.mulf %173, %172 : vector<8x128xf32>
    %cst_68 = arith.constant 0.707106769 : f32
    %175 = vector.broadcast %cst_68 : f32 to vector<8x128xf32>
    %176 = arith.mulf %172, %175 : vector<8x128xf32>
    %177 = math.erf %176 : vector<8x128xf32>
    %cst_69 = arith.constant 1.000000e+00 : f32
    %178 = vector.broadcast %cst_69 : f32 to vector<8x128xf32>
    %179 = arith.addf %178, %177 : vector<8x128xf32>
    %180 = arith.mulf %174, %179 : vector<8x128xf32>
    %181 = arith.truncf %180 : vector<8x128xf32> to vector<8x128xbf16>
    %c0_70 = arith.constant 0 : index
    %c0_71 = arith.constant 0 : index
    %182 = vector.load %arg14[%c0_70, %c0_71] : memref<128x32xbf16, #tpu.memory_space<vmem>>, vector<128x32xbf16>
    %cst_72 = arith.constant dense<0.000000e+00> : vector<8x32xf32>
    %183 = tpu.matmul %181, %182, %cst_72 {dimension_numbers = #tpu.dot_dimension_numbers<[1], [0], [0], [1], [0, 0, 1, 1], [], []>} : vector<8x128xbf16>, vector<128x32xbf16>, vector<8x32xf32> -> vector<8x32xf32>
    %c0_73 = arith.constant 0 : index
    %c0_74 = arith.constant 0 : index
    %184 = vector.load %arg15[%c0_73, %c0_74] : memref<1x32xf32, #tpu.memory_space<vmem>>, vector<1x32xf32>
    %185 = vector.broadcast %184 : vector<1x32xf32> to vector<8x32xf32>
    %186 = arith.addf %183, %185 : vector<8x32xf32>
    %187 = arith.addf %142, %186 : vector<8x32xf32>
    %c0_75 = arith.constant 0 : index
    %c0_76 = arith.constant 0 : index
    %188 = vector.load %arg16[%c0_75, %c0_76] : memref<1x32xf32, #tpu.memory_space<vmem>>, vector<1x32xf32>
    %c0_77 = arith.constant 0 : index
    %c0_78 = arith.constant 0 : index
    %189 = vector.load %arg17[%c0_77, %c0_78] : memref<1x32xf32, #tpu.memory_space<vmem>>, vector<1x32xf32>
    %cst_79 = arith.constant dense<0.000000e+00> : vector<8xf32>
    %190 = vector.multi_reduction <add>, %187, %cst_79 [1] : vector<8x32xf32> to vector<8xf32>
    %191 = vector.shape_cast %190 : vector<8xf32> to vector<8x1xf32>
    %cst_80 = arith.constant 3.200000e+01 : f32
    %192 = vector.broadcast %cst_80 : f32 to vector<8x1xf32>
    %193 = arith.divf %191, %192 : vector<8x1xf32>
    %194 = vector.broadcast %193 : vector<8x1xf32> to vector<8x32xf32>
    %195 = arith.subf %187, %194 : vector<8x32xf32>
    %196 = arith.mulf %195, %195 : vector<8x32xf32>
    %cst_81 = arith.constant dense<0.000000e+00> : vector<8xf32>
    %197 = vector.multi_reduction <add>, %196, %cst_81 [1] : vector<8x32xf32> to vector<8xf32>
    %198 = vector.shape_cast %197 : vector<8xf32> to vector<8x1xf32>
    %cst_82 = arith.constant 3.200000e+01 : f32
    %199 = vector.broadcast %cst_82 : f32 to vector<8x1xf32>
    %200 = arith.divf %198, %199 : vector<8x1xf32>
    %201 = vector.broadcast %193 : vector<8x1xf32> to vector<8x32xf32>
    %202 = arith.subf %187, %201 : vector<8x32xf32>
    %cst_83 = arith.constant 9.99999974E-6 : f32
    %203 = vector.broadcast %cst_83 : f32 to vector<8x1xf32>
    %204 = arith.addf %200, %203 : vector<8x1xf32>
    %205 = math.rsqrt %204 : vector<8x1xf32>
    %206 = vector.broadcast %205 : vector<8x1xf32> to vector<8x32xf32>
    %207 = arith.mulf %202, %206 : vector<8x32xf32>
    %208 = vector.broadcast %188 : vector<1x32xf32> to vector<8x32xf32>
    %209 = arith.mulf %207, %208 : vector<8x32xf32>
    %210 = vector.broadcast %189 : vector<1x32xf32> to vector<8x32xf32>
    %211 = arith.addf %209, %210 : vector<8x32xf32>
    %c0_84 = arith.constant 0 : index
    %c0_85 = arith.constant 0 : index
    %c0_86 = arith.constant 0 : index
    %212 = vector.load %arg18[%c0_84, %c0_85, %c0_86] : memref<1x8x32xf32, #tpu.memory_space<vmem>>, vector<1x8x32xf32>
    %213 = vector.shape_cast %212 : vector<1x8x32xf32> to vector<8x32xf32>
    %214 = vector.shape_cast %211 : vector<8x32xf32> to vector<1x8x32xf32>
    tpu.vector_store %arg18[%c0_84, %c0_85, %c0_86], %214 {strides = array<i32>} : memref<1x8x32xf32, #tpu.memory_space<vmem>>, vector<1x8x32xf32>,
    return
  }
  func.func @transform_0(%arg0: i32) -> (i32, i32, i32) {
    %c0_i32 = arith.constant 0 : i32
    %c0_i32_0 = arith.constant 0 : i32
    %c0_i32_1 = arith.constant 0 : i32
    return %arg0, %c0_i32, %c0_i32_0 : i32, i32, i32
  }
  func.func @transform_1(%arg0: i32) -> (i32, i32) {
    %c0_i32 = arith.constant 0 : i32
    %c0_i32_0 = arith.constant 0 : i32
    %c0_i32_1 = arith.constant 0 : i32
    return %c0_i32, %c0_i32_0 : i32, i32
  }
  func.func @transform_2(%arg0: i32) -> (i32, i32) {
    %c0_i32 = arith.constant 0 : i32
    %c0_i32_0 = arith.constant 0 : i32
    %c0_i32_1 = arith.constant 0 : i32
    return %c0_i32, %c0_i32_0 : i32, i32
  }
  func.func @transform_3(%arg0: i32) -> (i32, i32) {
    %c0_i32 = arith.constant 0 : i32
    %c0_i32_0 = arith.constant 0 : i32
    %c0_i32_1 = arith.constant 0 : i32
    return %c0_i32, %c0_i32_0 : i32, i32
  }
  func.func @transform_4(%arg0: i32) -> (i32, i32) {
    %c0_i32 = arith.constant 0 : i32
    %c0_i32_0 = arith.constant 0 : i32
    %c0_i32_1 = arith.constant 0 : i32
    return %c0_i32, %c0_i32_0 : i32, i32
  }
  func.func @transform_5(%arg0: i32) -> (i32, i32) {
    %c0_i32 = arith.constant 0 : i32
    %c0_i32_0 = arith.constant 0 : i32
    %c0_i32_1 = arith.constant 0 : i32
    return %c0_i32, %c0_i32_0 : i32, i32
  }
  func.func @transform_6(%arg0: i32) -> (i32, i32) {
    %c0_i32 = arith.constant 0 : i32
    %c0_i32_0 = arith.constant 0 : i32
    %c0_i32_1 = arith.constant 0 : i32
    return %c0_i32, %c0_i32_0 : i32, i32
  }
  func.func @transform_7(%arg0: i32) -> (i32, i32) {
    %c0_i32 = arith.constant 0 : i32
    %c0_i32_0 = arith.constant 0 : i32
    %c0_i32_1 = arith.constant 0 : i32
    return %c0_i32, %c0_i32_0 : i32, i32
  }
  func.func @transform_8(%arg0: i32) -> (i32, i32) {
    %c0_i32 = arith.constant 0 : i32
    %c0_i32_0 = arith.constant 0 : i32
    %c0_i32_1 = arith.constant 0 : i32
    return %c0_i32, %c0_i32_0 : i32, i32
  }
  func.func @transform_9(%arg0: i32) -> (i32, i32) {
    %c0_i32 = arith.constant 0 : i32
    %c0_i32_0 = arith.constant 0 : i32
    %c0_i32_1 = arith.constant 0 : i32
    return %c0_i32, %c0_i32_0 : i32, i32
  }
  func.func @transform_10(%arg0: i32) -> (i32, i32) {
    %c0_i32 = arith.constant 0 : i32
    %c0_i32_0 = arith.constant 0 : i32
    %c0_i32_1 = arith.constant 0 : i32
    return %c0_i32, %c0_i32_0 : i32, i32
  }
  func.func @transform_11(%arg0: i32) -> (i32, i32) {
    %c0_i32 = arith.constant 0 : i32
    %c0_i32_0 = arith.constant 0 : i32
    %c0_i32_1 = arith.constant 0 : i32
    return %c0_i32, %c0_i32_0 : i32, i32
  }
  func.func @transform_12(%arg0: i32) -> (i32, i32) {
    %c0_i32 = arith.constant 0 : i32
    %c0_i32_0 = arith.constant 0 : i32
    %c0_i32_1 = arith.constant 0 : i32
    return %c0_i32, %c0_i32_0 : i32, i32
  }
  func.func @transform_13(%arg0: i32) -> (i32, i32) {
    %c0_i32 = arith.constant 0 : i32
    %c0_i32_0 = arith.constant 0 : i32
    %c0_i32_1 = arith.constant 0 : i32
    return %c0_i32, %c0_i32_0 : i32, i32
  }
  func.func @transform_14(%arg0: i32) -> (i32, i32) {
    %c0_i32 = arith.constant 0 : i32
    %c0_i32_0 = arith.constant 0 : i32
    %c0_i32_1 = arith.constant 0 : i32
    return %c0_i32, %c0_i32_0 : i32, i32
  }
  func.func @transform_15(%arg0: i32) -> (i32, i32) {
    %c0_i32 = arith.constant 0 : i32
    %c0_i32_0 = arith.constant 0 : i32
    %c0_i32_1 = arith.constant 0 : i32
    return %c0_i32, %c0_i32_0 : i32, i32
  }
  func.func @transform_16(%arg0: i32) -> (i32, i32) {
    %c0_i32 = arith.constant 0 : i32
    %c0_i32_0 = arith.constant 0 : i32
    %c0_i32_1 = arith.constant 0 : i32
    return %c0_i32, %c0_i32_0 : i32, i32
  }
  func.func @transform_17(%arg0: i32) -> (i32, i32, i32) {
    %c0_i32 = arith.constant 0 : i32
    %c0_i32_0 = arith.constant 0 : i32
    %c0_i32_1 = arith.constant 0 : i32
    return %arg0, %c0_i32, %c0_i32_0 : i32, i32, i32
  }
}

</mosaic_0001>

<bundles_post_ra>
// kernel: tpu_custom_call.1
= control target key start
LH: loop header
LB: loop body
LE: loop exit
PB: predicated region body
PF: predicated region fallthrough
CT: control target
= control target key end

     0   :  { %s3737_s0 = inlined_call_operand.hbm [shape: f32[2,8,32], index: 0, kind: input, shape index: {}]   ;;  %s3738_s1 = inlined_call_operand.hbm [shape: f32[1,32], index: 1, kind: input, shape index: {}]   ;;  %s3739_s2 = inlined_call_operand.hbm [shape: f32[1,32], index: 2, kind: input, shape index: {}]   ;;  %s3740_s3 = inlined_call_operand.hbm [shape: bf16[32,96], index: 3, kind: input, shape index: {}]   ;;  %s3741_s4 = inlined_call_operand.hbm [shape: f32[1,96], index: 4, kind: input, shape index: {}]   ;;  %s3742_s5 = inlined_call_operand.hbm [shape: bf16[32,32], index: 5, kind: input, shape index: {}]   ;;  %s3743_s6 = inlined_call_operand.hbm [shape: f32[1,32], index: 6, kind: input, shape index: {}]   ;;  %s3744_s7 = inlined_call_operand.hbm [shape: f32[1,32], index: 7, kind: input, shape index: {}]   ;;  %s3745_s8 = inlined_call_operand.hbm [shape: f32[1,32], index: 8, kind: input, shape index: {}]   ;;  %s3746_s9 = inlined_call_operand.hbm [shape: bf16[32,128], index: 9, kind: input, shape index: {}]   ;;  %s3747_s10 = inlined_call_operand.hbm [shape: f32[1,128], index: 10, kind: input, shape index: {}]   ;;  %s3748_s11 = inlined_call_operand.hbm [shape: f32[1,128], index: 11, kind: input, shape index: {}]   ;;  %s3749_s12 = inlined_call_operand.hbm [shape: f32[1,128], index: 12, kind: input, shape index: {}]   ;;  %s3750_s13 = inlined_call_operand.hbm [shape: bf16[128,32], index: 13, kind: input, shape index: {}]   ;;  %s3751_s14 = inlined_call_operand.hbm [shape: f32[1,32], index: 14, kind: input, shape index: {}]   ;;  %s3752_s15 = inlined_call_operand.hbm [shape: f32[1,32], index: 15, kind: input, shape index: {}]   ;;  %s3753_s16 = inlined_call_operand.hbm [shape: f32[1,32], index: 16, kind: input, shape index: {}]   ;;  %s3754_s17 = inlined_call_operand.hbm [shape: f32[2,8,32], index: 17, kind: output, shape index: {}]  }
   0x1   :  { %3771 = sst [smem:[#allocation47_spill]] %s3737_s0 }
   0x2   :  { %3772 = sst [smem:[#allocation48_spill]] %s3738_s1 }
   0x3   :  { %3773 = sst [smem:[#allocation49_spill]] %s3739_s2 }
   0x4   :  { %3774 = sst [smem:[#allocation50_spill]] %s3740_s3 }
   0x5   :  { %3775 = sst [smem:[#allocation51_spill]] %s3754_s17 }
   0x6   :  { %22 = vsyncpa [#allocation4], 0 }
   0x7   :  { %24 = vsyncpa [#allocation4 + $0x1], 0 }
   0x8   :  { %25 = vsyncpa [#allocation7], 0 }
   0x9   :  { %26 = vsyncpa [#allocation10], 0 }
   0xa   :  { %27 = vsyncpa [#allocation13], 0 }
   0xb   :  { %28 = vsyncpa [#allocation16], 0 }
   0xc   :  { %29 = vsyncpa [#allocation19], 0 }
   0xd   :  { %30 = vsyncpa [#allocation22], 0 }
   0xe   :  { %31 = vsyncpa [#allocation25], 0 }
   0xf   :  { %32 = vsyncpa [#allocation28], 0 }
  0x10   :  { %33 = vsyncpa [#allocation5], 0 }
  0x11   :  { %35 = vsyncpa [#allocation5 + $0x1], 0  ;;  %s3105_s24 = smov 0   ;;  %s3107_s25 = smov 0  }
  0x12   :  { %s3109_s26 = smov 0   ;;  %s3111_s27 = smov 0  }
  0x13 LB: > { %3776 = sst [smem:[#allocation41_spill]] %s2965_s24  ;;  %s2979_s28 = smov [#allocation6]   ;;  %s2977_s27 = sphi %s3111_s27, %s3474_s27   ;;  %s2973_s26 = sphi %s3109_s26, %s3831_s26   ;;  %s2969_s25 = sphi %s3107_s25, %s3830_s25   ;;  %s2965_s24 = sphi %s3105_s24, %s3827_s24  }
  0x14   : > { %3777 = sst [smem:[#allocation42_spill]] %s2969_s25  ;;  %s447_s29 = sshll.u32 %s2979_s28, 4  ;;  %s3131_s29 = int_to_ptr.vmem [resolvable:$true] %s447_s29 }
  0x15   : > { %3778 = sst [smem:[#allocation43_spill]] %s2973_s26  ;;  %s3126_s0 = sadd.s32 4294967295, %s2977_s27  }
  0x16   : > { %3779 = sst [smem:[#allocation44_spill]] %s2977_s27  ;;  %p1924_p0 = scmp.ge.s32.totalorder %s2977_s27, 1 }
  0x17   : > { %3780 = sst [smem:[#allocation45_spill]] %s3126_s0  ;;  %p3767_p1 = scmp.eq.s32.totalorder %s3126_s0, 0 }
  0x18   : > { %p434_p2 = scmp.lt.s32.totalorder %s2977_s27, 3  ;;  %s2980_s18 = smov [#allocation9]  }
  0x19   : > { %s468_s19 = sshll.u32 %s2980_s18, 4  ;;  %s2981_s20 = smov [#allocation12]   ;;  %s3140_s19 = int_to_ptr.vmem [resolvable:$true] %s468_s19 }
  0x1a   : > { %p3133_p3 = pnand %p1924_p0, %p434_p2  ;;  %s492_s21 = sshll.u32 %s2981_s20, 4  ;;  %s3148_s21 = int_to_ptr.vmem [resolvable:$true] %s492_s21 }
  0x1b   : > { %s3784_s28 = sld [smem:[#allocation48_spill]] }
  0x1c   : > { %s3781_s30 = scalar_select %p3133_p3, 1, 0 }
  0x1d   : > { %p2204_p5 = pneg %p3133_p3 }
  0x1e   : > { %3782 = sst [smem:[#allocation46_spill]] %s3781_s30 }
  0x1f   : > { %p3144_p6 = pnand %p2204_p5, %p3767_p1 }
  0x21   : > { %s2401_s17 = scalar_lea.hbm %s3784_s28, 16  ;;  %p3158_p8 = pneg %p3144_p6 }
  0x22   : > { %p2402_p7 = scmp.ne.s32.totalorder %s3784_s28, %s2401_s17  ;;  %p2408_p11 = scmp.lt.u32.totalorder %s2401_s17, %s3784_s28 }
  0x24   : > { %p2404_p9 = pnand %p3158_p8, %p2402_p7 }
  0x26   : > { %p2405_p10 = pneg %p2404_p9 }
  0x28   : > { %p2410_p12 = pnand %p2408_p11, %p2405_p10 }
  0x2a   : > { %2413 = shalt.err (!%p2410_p12)
}
  0x2b   : > { %s2414_s24 = scalar_lea.vmem %s3131_s29, 16  ;;  %s2421_s30 = scalar_lea.vmem %s3131_s29, 32 }
  0x2c   : > { %p2415_p13 = scmp.ne.s32.totalorder %s3131_s29, %s2414_s24  ;;  %p2422_p5 = scmp.lt.s32.totalorder %s3131_s29, %s3131_s29 }
  0x2d   : > { %p2423_p7 = scmp.lt.s32.totalorder %s2421_s30, %s2414_s24 }
  0x2e   : > { %p2417_p0 = pnand %p2415_p13, %p3158_p8 }
  0x2f   : > { %p2424_p9 = por %p2423_p7, %p2422_p5 }
  0x30   : > { %p2418_p2 = pneg %p2417_p0 }
  0x32   : > { %p2425_p4 = pnand %p2424_p9, %p2418_p2 }
  0x34   : > { %2428 = shalt.err (!%p2425_p4)
}
  0x35   : > { %2207 = dma.hbm_to_vmem [thread:$0]  (!%p3144_p6), %s3784_s28, 16, %s3131_s29, [#allocation7]  }
  0x36   : > { %s3786_s3 = sld [smem:[#allocation50_spill]] }
  0x3c   : > { %s2429_s20 = scalar_lea.hbm %s3786_s3, 256 }
  0x3d   : > { %p2430_p10 = scmp.ne.s32.totalorder %s3786_s3, %s2429_s20  ;;  %p2436_p4 = scmp.lt.u32.totalorder %s2429_s20, %s3786_s3 }
  0x3f   : > { %p2432_p11 = pnand %p2430_p10, %p3158_p8 }
  0x41   : > { %p2433_p12 = pneg %p2432_p11 }
  0x43   : > { %p2438_p13 = pnand %p2436_p4, %p2433_p12 }
  0x45   : > { %2441 = shalt.err (!%p2438_p13)
}
  0x46   : > { %s2442_s29 = scalar_lea.vmem %s3140_s19, 256  ;;  %p2450_p7 = scmp.lt.s32.totalorder %s3140_s19, %s3140_s19 }
  0x47   : > { %p2443_p0 = scmp.ne.s32.totalorder %s3140_s19, %s2442_s29  ;;  %p2451_p9 = scmp.lt.s32.totalorder %s2442_s29, %s2442_s29 }
  0x49   : > { %p2445_p2 = pnand %p2443_p0, %p3158_p8  ;;  %p2452_p10 = por %p2451_p9, %p2450_p7 }
  0x4b   : > { %p2446_p5 = pneg %p2445_p2 }
  0x4d   : > { %p2453_p11 = pnand %p2452_p10, %p2446_p5 }
  0x4f   : > { %2456 = shalt.err (!%p2453_p11)
}
  0x50   : > { %s2982_s25 = smov 64   ;;  %s2983_s26 = smov 4  }
  0x51   : > { %2213 = dma.hbm_to_vmem [thread:$0]  (!%p3144_p6), %s3786_s3, 256, %s3140_s19, [#allocation10], %s2982_s25, %s2982_s25, %s2983_s26  }
  0x52   : > { %s2457_s20 = scalar_lea.hbm %s3742_s5, 256 }
  0x53   : > { %p2458_p12 = scmp.ne.s32.totalorder %s3742_s5, %s2457_s20  ;;  %p2464_p0 = scmp.lt.u32.totalorder %s2457_s20, %s3742_s5 }
  0x55   : > { %p2460_p4 = pnand %p2458_p12, %p3158_p8 }
  0x57   : > { %p2461_p13 = pneg %p2460_p4 }
  0x59   : > { %p2466_p2 = pnand %p2464_p0, %p2461_p13 }
  0x5b   : > { %2469 = shalt.err (!%p2466_p2)
}
  0x5c   : > { %s2470_s19 = scalar_lea.vmem %s3148_s21, 256  ;;  %p2478_p10 = scmp.lt.s32.totalorder %s3148_s21, %s3148_s21 }
  0x5d   : > { %p2471_p5 = scmp.ne.s32.totalorder %s3148_s21, %s2470_s19  ;;  %p2479_p11 = scmp.lt.s32.totalorder %s2470_s19, %s2470_s19 }
  0x5f   : > { %p2473_p7 = pnand %p2471_p5, %p3158_p8  ;;  %p2480_p12 = por %p2479_p11, %p2478_p10 }
  0x61   : > { %p2474_p9 = pneg %p2473_p7 }
  0x63   : > { %p2481_p4 = pnand %p2480_p12, %p2474_p9 }
  0x65   : > { %2484 = shalt.err (!%p2481_p4)
}
  0x66   : > { %2219 = dma.hbm_to_vmem [thread:$0]  (!%p3144_p6), %s3742_s5, 256, %s3148_s21, [#allocation13], %s2982_s25, %s2982_s25, %s2983_s26  }
  0x67   : > { %s2984_s0 = smov [#allocation15]   ;;  %s2985_s23 = smov [#allocation18]  }
  0x68   : > { %s517_s22 = sshll.u32 %s2984_s0, 4  ;;  %s538_s20 = sshll.u32 %s2985_s23, 4  ;;  %s518_s22 = int_to_ptr.vmem [resolvable:$true] %s517_s22  ;;  %s539_s20 = int_to_ptr.vmem [resolvable:$true] %s538_s20 }
  0x69   : > { %s2485_s29 = scalar_lea.hbm %s3744_s7, 16 }
  0x6a   : > { %p2486_p13 = scmp.ne.s32.totalorder %s3744_s7, %s2485_s29  ;;  %p2492_p5 = scmp.lt.u32.totalorder %s2485_s29, %s3744_s7 }
  0x6c   : > { %p2488_p0 = pnand %p2486_p13, %p3158_p8 }
  0x6e   : > { %p2489_p2 = pneg %p2488_p0 }
  0x70   : > { %p2494_p7 = pnand %p2492_p5, %p2489_p2 }
  0x72   : > { %2497 = shalt.err (!%p2494_p7)
}
  0x73   : > { %s2498_s21 = scalar_lea.vmem %s518_s22, 16  ;;  %s2505_s17 = scalar_lea.vmem %s518_s22, 32 }
  0x74   : > { %p2499_p9 = scmp.ne.s32.totalorder %s518_s22, %s2498_s21  ;;  %p2506_p12 = scmp.lt.s32.totalorder %s518_s22, %s518_s22 }
  0x75   : > { %p2507_p4 = scmp.lt.s32.totalorder %s2505_s17, %s2498_s21 }
  0x76   : > { %p2501_p10 = pnand %p2499_p9, %p3158_p8 }
  0x77   : > { %p2508_p1 = por %p2507_p4, %p2506_p12 }
  0x78   : > { %p2502_p11 = pneg %p2501_p10 }
  0x7a   : > { %p2509_p3 = pnand %p2508_p1, %p2502_p11 }
  0x7c   : > { %2512 = shalt.err (!%p2509_p3)
}
  0x7d   : > { %2225 = dma.hbm_to_vmem [thread:$0]  (!%p3144_p6), %s3744_s7, 16, %s518_s22, [#allocation16]  }
  0x7e   : > { %s2513_s24 = scalar_lea.hbm %s3746_s9, 256 }
  0x7f   : > { %p2514_p13 = scmp.ne.s32.totalorder %s3746_s9, %s2513_s24  ;;  %p2520_p3 = scmp.lt.u32.totalorder %s2513_s24, %s3746_s9 }
  0x81   : > { %p2516_p0 = pnand %p2514_p13, %p3158_p8 }
  0x83   : > { %p2517_p1 = pneg %p2516_p0 }
  0x85   : > { %p2522_p2 = pnand %p2520_p3, %p2517_p1 }
  0x87   : > { %2525 = shalt.err (!%p2522_p2)
}
  0x88   : > { %s2526_s21 = scalar_lea.vmem %s539_s20, 256  ;;  %p2534_p10 = scmp.lt.s32.totalorder %s539_s20, %s539_s20 }
  0x89   : > { %p2527_p5 = scmp.ne.s32.totalorder %s539_s20, %s2526_s21  ;;  %p2535_p11 = scmp.lt.s32.totalorder %s2526_s21, %s2526_s21 }
  0x8b   : > { %p2529_p7 = pnand %p2527_p5, %p3158_p8  ;;  %p2536_p12 = por %p2535_p11, %p2534_p10 }
  0x8d   : > { %p2530_p9 = pneg %p2529_p7 }
  0x8f   : > { %p2537_p4 = pnand %p2536_p12, %p2530_p9 }
  0x91   : > { %2540 = shalt.err (!%p2537_p4)
}
  0x92   : > { %2231 = dma.hbm_to_vmem [thread:$0]  (!%p3144_p6), %s3746_s9, 256, %s539_s20, [#allocation19], %s2982_s25, %s2982_s25, %s2983_s26  }
  0x93   : > { %s2986_s3 = smov [#allocation21]   ;;  %s2987_s27 = smov [#allocation24]  }
  0x94   : > { %s563_s0 = sshll.u32 %s2986_s3, 4  ;;  %s584_s23 = sshll.u32 %s2987_s27, 4  ;;  %s564_s0 = int_to_ptr.vmem [resolvable:$true] %s563_s0  ;;  %s585_s23 = int_to_ptr.vmem [resolvable:$true] %s584_s23 }
  0x95   : > { %s2541_s29 = scalar_lea.hbm %s3748_s11, 16 }
  0x96   : > { %p2542_p13 = scmp.ne.s32.totalorder %s3748_s11, %s2541_s29  ;;  %p2548_p3 = scmp.lt.u32.totalorder %s2541_s29, %s3748_s11 }
  0x98   : > { %p2544_p0 = pnand %p2542_p13, %p3158_p8 }
  0x9a   : > { %p2545_p1 = pneg %p2544_p0 }
  0x9c   : > { %p2550_p2 = pnand %p2548_p3, %p2545_p1 }
  0x9e   : > { %2553 = shalt.err (!%p2550_p2)
}
  0x9f   : > { %s2554_s20 = scalar_lea.vmem %s564_s0, 16  ;;  %s2561_s17 = scalar_lea.vmem %s564_s0, 32 }
  0xa0   : > { %p2555_p5 = scmp.ne.s32.totalorder %s564_s0, %s2554_s20  ;;  %p2562_p10 = scmp.lt.s32.totalorder %s564_s0, %s564_s0 }
  0xa1   : > { %p2563_p11 = scmp.lt.s32.totalorder %s2561_s17, %s2554_s20 }
  0xa2   : > { %p2557_p7 = pnand %p2555_p5, %p3158_p8 }
  0xa3   : > { %p2564_p12 = por %p2563_p11, %p2562_p10 }
  0xa4   : > { %p2558_p9 = pneg %p2557_p7 }
  0xa6   : > { %p2565_p4 = pnand %p2564_p12, %p2558_p9 }
  0xa8   : > { %2568 = shalt.err (!%p2565_p4)
}
  0xa9   : > { %2237 = dma.hbm_to_vmem [thread:$0]  (!%p3144_p6), %s3748_s11, 16, %s564_s0, [#allocation22]  }
  0xaa   : > { %s2569_s29 = scalar_lea.hbm %s3750_s13, 1024 }
  0xab   : > { %p2570_p13 = scmp.ne.s32.totalorder %s3750_s13, %s2569_s29  ;;  %p2576_p3 = scmp.lt.u32.totalorder %s2569_s29, %s3750_s13 }
  0xad   : > { %p2572_p0 = pnand %p2570_p13, %p3158_p8 }
  0xaf   : > { %p2573_p1 = pneg %p2572_p0 }
  0xb1   : > { %p2578_p2 = pnand %p2576_p3, %p2573_p1 }
  0xb3   : > { %2581 = shalt.err (!%p2578_p2)
}
  0xb4   : > { %s2582_s20 = scalar_lea.vmem %s585_s23, 1024  ;;  %p2590_p10 = scmp.lt.s32.totalorder %s585_s23, %s585_s23 }
  0xb5   : > { %p2583_p5 = scmp.ne.s32.totalorder %s585_s23, %s2582_s20  ;;  %p2591_p11 = scmp.lt.s32.totalorder %s2582_s20, %s2582_s20 }
  0xb7   : > { %p2585_p7 = pnand %p2583_p5, %p3158_p8  ;;  %p2592_p12 = por %p2591_p11, %p2590_p10 }
  0xb9   : > { %p2586_p9 = pneg %p2585_p7 }
  0xbb   : > { %p2593_p4 = pnand %p2592_p12, %p2586_p9 }
  0xbd   : > { %2596 = shalt.err (!%p2593_p4)
}
  0xbe   : > { %2243 = dma.hbm_to_vmem [thread:$0]  (!%p3144_p6), %s3750_s13, 1024, %s585_s23, [#allocation25], %s2982_s25, %s2982_s25, %s2983_s26  }
  0xbf   : > { %s2988_s3 = smov [#allocation27]   ;;  %s2989_s24 = smov [#allocation8]  }
  0xc0   : > { %s609_s27 = sshll.u32 %s2988_s3, 4  ;;  %s458_s30 = sshll.u32 %s2989_s24, 4  ;;  %s610_s27 = int_to_ptr.vmem [resolvable:$true] %s609_s27  ;;  %s459_s30 = int_to_ptr.vmem [resolvable:$true] %s458_s30 }
  0xc1   : > { %s2597_s28 = scalar_lea.hbm %s3752_s15, 16 }
  0xc2   : > { %p2598_p13 = scmp.ne.s32.totalorder %s3752_s15, %s2597_s28  ;;  %p2604_p3 = scmp.lt.u32.totalorder %s2597_s28, %s3752_s15 }
  0xc4   : > { %p2600_p0 = pnand %p2598_p13, %p3158_p8 }
  0xc6   : > { %p2601_p1 = pneg %p2600_p0 }
  0xc8   : > { %p2606_p2 = pnand %p2604_p3, %p2601_p1 }
  0xca   : > { %2609 = shalt.err (!%p2606_p2)
}
  0xcb   : > { %s2610_s25 = scalar_lea.vmem %s610_s27, 16  ;;  %s2617_s26 = scalar_lea.vmem %s610_s27, 32 }
  0xcc   : > { %p2611_p5 = scmp.ne.s32.totalorder %s610_s27, %s2610_s25  ;;  %p2618_p10 = scmp.lt.s32.totalorder %s610_s27, %s610_s27 }
  0xcd   : > { %p2619_p11 = scmp.lt.s32.totalorder %s2617_s26, %s2610_s25 }
  0xce   : > { %p2613_p7 = pnand %p2611_p5, %p3158_p8 }
  0xcf   : > { %p2620_p12 = por %p2619_p11, %p2618_p10 }
  0xd0   : > { %p2614_p9 = pneg %p2613_p7 }
  0xd2   : > { %p2621_p4 = pnand %p2620_p12, %p2614_p9 }
  0xd4   : > { %2624 = shalt.err (!%p2621_p4)
}
  0xd5   : > { %2249 = dma.hbm_to_vmem [thread:$0]  (!%p3144_p6), %s3752_s15, 16, %s610_s27, [#allocation28]  }
  0xd6   : > { %s3787_s2 = sld [smem:[#allocation49_spill]] }
  0xdc   : > { %s2625_s29 = scalar_lea.hbm %s3787_s2, 16 }
  0xdd   : > { %p2626_p13 = scmp.ne.s32.totalorder %s3787_s2, %s2625_s29  ;;  %p2632_p3 = scmp.lt.u32.totalorder %s2625_s29, %s3787_s2 }
  0xdf   : > { %p2628_p0 = pnand %p2626_p13, %p3158_p8 }
  0xe1   : > { %p2629_p1 = pneg %p2628_p0 }
  0xe3   : > { %p2634_p2 = pnand %p2632_p3, %p2629_p1 }
  0xe5   : > { %2637 = shalt.err (!%p2634_p2)
}
  0xe6   : > { %s2638_s20 = scalar_lea.vmem %s459_s30, 16  ;;  %s2645_s27 = scalar_lea.vmem %s459_s30, 32 }
  0xe7   : > { %p2639_p5 = scmp.ne.s32.totalorder %s459_s30, %s2638_s20  ;;  %p2646_p10 = scmp.lt.s32.totalorder %s459_s30, %s459_s30 }
  0xe8   : > { %p2647_p11 = scmp.lt.s32.totalorder %s2645_s27, %s2638_s20 }
  0xe9   : > { %p2641_p7 = pnand %p2639_p5, %p3158_p8 }
  0xea   : > { %p2648_p12 = por %p2647_p11, %p2646_p10 }
  0xeb   : > { %p2642_p9 = pneg %p2641_p7 }
  0xed   : > { %p2649_p4 = pnand %p2648_p12, %p2642_p9 }
  0xef   : > { %2652 = shalt.err (!%p2649_p4)
}
  0xf0   : > { %2210 = dma.hbm_to_vmem [thread:$0]  (!%p3144_p6), %s3787_s2, 16, %s459_s30, [#allocation7]  }
  0xf1   : > { %s2990_s26 = smov [#allocation11]   ;;  %s2991_s17 = smov [#allocation14]  }
  0xf2   : > { %s482_s23 = sshll.u32 %s2990_s26, 4  ;;  %s506_s3 = sshll.u32 %s2991_s17, 4  ;;  %s483_s23 = int_to_ptr.vmem [resolvable:$true] %s482_s23  ;;  %s507_s3 = int_to_ptr.vmem [resolvable:$true] %s506_s3 }
  0xf3   : > { %s2653_s19 = scalar_lea.hbm %s3741_s4, 16 }
  0xf4   : > { %p2654_p13 = scmp.ne.s32.totalorder %s3741_s4, %s2653_s19  ;;  %p2660_p3 = scmp.lt.u32.totalorder %s2653_s19, %s3741_s4 }
  0xf6   : > { %p2656_p0 = pnand %p2654_p13, %p3158_p8 }
  0xf8   : > { %p2657_p1 = pneg %p2656_p0 }
  0xfa   : > { %p2662_p2 = pnand %p2660_p3, %p2657_p1 }
  0xfc   : > { %2665 = shalt.err (!%p2662_p2)
}
  0xfd   : > { %s2666_s30 = scalar_lea.vmem %s483_s23, 16  ;;  %s2673_s27 = scalar_lea.vmem %s483_s23, 32 }
  0xfe   : > { %p2667_p5 = scmp.ne.s32.totalorder %s483_s23, %s2666_s30  ;;  %p2674_p10 = scmp.lt.s32.totalorder %s483_s23, %s483_s23 }
  0xff   : > { %p2675_p11 = scmp.lt.s32.totalorder %s2673_s27, %s2666_s30 }
 0x100   : > { %p2669_p7 = pnand %p2667_p5, %p3158_p8 }
 0x101   : > { %p2676_p12 = por %p2675_p11, %p2674_p10 }
 0x102   : > { %p2670_p9 = pneg %p2669_p7 }
 0x104   : > { %p2677_p4 = pnand %p2676_p12, %p2670_p9 }
 0x106   : > { %2680 = shalt.err (!%p2677_p4)
}
 0x107   : > { %2216 = dma.hbm_to_vmem [thread:$0]  (!%p3144_p6), %s3741_s4, 16, %s483_s23, [#allocation10]  }
 0x108   : > { %s2681_s24 = scalar_lea.hbm %s3743_s6, 16 }
 0x109   : > { %p2682_p13 = scmp.ne.s32.totalorder %s3743_s6, %s2681_s24  ;;  %p2688_p3 = scmp.lt.u32.totalorder %s2681_s24, %s3743_s6 }
 0x10b   : > { %p2684_p0 = pnand %p2682_p13, %p3158_p8 }
 0x10d   : > { %p2685_p1 = pneg %p2684_p0 }
 0x10f   : > { %p2690_p2 = pnand %p2688_p3, %p2685_p1 }
 0x111   : > { %2693 = shalt.err (!%p2690_p2)
}
 0x112   : > { %s2694_s22 = scalar_lea.vmem %s507_s3, 16  ;;  %s2701_s23 = scalar_lea.vmem %s507_s3, 32 }
 0x113   : > { %p2695_p5 = scmp.ne.s32.totalorder %s507_s3, %s2694_s22  ;;  %p2702_p10 = scmp.lt.s32.totalorder %s507_s3, %s507_s3 }
 0x114   : > { %p2703_p11 = scmp.lt.s32.totalorder %s2701_s23, %s2694_s22 }
 0x115   : > { %p2697_p7 = pnand %p2695_p5, %p3158_p8 }
 0x116   : > { %p2704_p12 = por %p2703_p11, %p2702_p10 }
 0x117   : > { %p2698_p9 = pneg %p2697_p7 }
 0x119   : > { %p2705_p4 = pnand %p2704_p12, %p2698_p9 }
 0x11b   : > { %2708 = shalt.err (!%p2705_p4)
}
 0x11c   : > { %2222 = dma.hbm_to_vmem [thread:$0]  (!%p3144_p6), %s3743_s6, 16, %s507_s3, [#allocation13]  }
 0x11d   : > { %s2992_s27 = smov [#allocation17]   ;;  %s2993_s25 = smov [#allocation20]  }
 0x11e   : > { %s528_s0 = sshll.u32 %s2992_s27, 4  ;;  %s552_s26 = sshll.u32 %s2993_s25, 4  ;;  %s529_s0 = int_to_ptr.vmem [resolvable:$true] %s528_s0  ;;  %s553_s26 = int_to_ptr.vmem [resolvable:$true] %s552_s26 }
 0x11f   : > { %s2709_s29 = scalar_lea.hbm %s3745_s8, 16 }
 0x120   : > { %p2710_p13 = scmp.ne.s32.totalorder %s3745_s8, %s2709_s29  ;;  %p2716_p3 = scmp.lt.u32.totalorder %s2709_s29, %s3745_s8 }
 0x122   : > { %p2712_p0 = pnand %p2710_p13, %p3158_p8 }
 0x124   : > { %p2713_p1 = pneg %p2712_p0 }
 0x126   : > { %p2718_p2 = pnand %p2716_p3, %p2713_p1 }
 0x128   : > { %2721 = shalt.err (!%p2718_p2)
}
 0x129   : > { %s2722_s3 = scalar_lea.vmem %s529_s0, 16  ;;  %s2729_s23 = scalar_lea.vmem %s529_s0, 32 }
 0x12a   : > { %p2723_p5 = scmp.ne.s32.totalorder %s529_s0, %s2722_s3  ;;  %p2730_p10 = scmp.lt.s32.totalorder %s529_s0, %s529_s0 }
 0x12b   : > { %p2731_p11 = scmp.lt.s32.totalorder %s2729_s23, %s2722_s3 }
 0x12c   : > { %p2725_p7 = pnand %p2723_p5, %p3158_p8 }
 0x12d   : > { %p2732_p12 = por %p2731_p11, %p2730_p10 }
 0x12e   : > { %p2726_p9 = pneg %p2725_p7 }
 0x130   : > { %p2733_p4 = pnand %p2732_p12, %p2726_p9 }
 0x132   : > { %2736 = shalt.err (!%p2733_p4)
}
 0x133   : > { %2228 = dma.hbm_to_vmem [thread:$0]  (!%p3144_p6), %s3745_s8, 16, %s529_s0, [#allocation16]  }
 0x134   : > { %s2737_s17 = scalar_lea.hbm %s3747_s10, 16 }
 0x135   : > { %p2738_p13 = scmp.ne.s32.totalorder %s3747_s10, %s2737_s17  ;;  %p2744_p3 = scmp.lt.u32.totalorder %s2737_s17, %s3747_s10 }
 0x137   : > { %p2740_p0 = pnand %p2738_p13, %p3158_p8 }
 0x139   : > { %p2741_p1 = pneg %p2740_p0 }
 0x13b   : > { %p2746_p2 = pnand %p2744_p3, %p2741_p1 }
 0x13d   : > { %2749 = shalt.err (!%p2746_p2)
}
 0x13e   : > { %s2750_s21 = scalar_lea.vmem %s553_s26, 16  ;;  %s2757_s0 = scalar_lea.vmem %s553_s26, 32 }
 0x13f   : > { %p2751_p5 = scmp.ne.s32.totalorder %s553_s26, %s2750_s21  ;;  %p2758_p10 = scmp.lt.s32.totalorder %s553_s26, %s553_s26 }
 0x140   : > { %p2759_p11 = scmp.lt.s32.totalorder %s2757_s0, %s2750_s21 }
 0x141   : > { %p2753_p7 = pnand %p2751_p5, %p3158_p8 }
 0x142   : > { %p2760_p12 = por %p2759_p11, %p2758_p10 }
 0x143   : > { %p2754_p9 = pneg %p2753_p7 }
 0x145   : > { %p2761_p4 = pnand %p2760_p12, %p2754_p9 }
 0x147   : > { %2764 = shalt.err (!%p2761_p4)
}
 0x148   : > { %2234 = dma.hbm_to_vmem [thread:$0]  (!%p3144_p6), %s3747_s10, 16, %s553_s26, [#allocation19]  }
 0x149   : > { %s2994_s23 = smov [#allocation23]   ;;  %s2995_s30 = smov [#allocation26]  }
 0x14a   : > { %s574_s20 = sshll.u32 %s2994_s23, 4  ;;  %s598_s27 = sshll.u32 %s2995_s30, 4  ;;  %s575_s20 = int_to_ptr.vmem [resolvable:$true] %s574_s20  ;;  %s599_s27 = int_to_ptr.vmem [resolvable:$true] %s598_s27 }
 0x14b   : > { %s2765_s24 = scalar_lea.hbm %s3749_s12, 16 }
 0x14c   : > { %p2766_p13 = scmp.ne.s32.totalorder %s3749_s12, %s2765_s24  ;;  %p2772_p3 = scmp.lt.u32.totalorder %s2765_s24, %s3749_s12 }
 0x14e   : > { %p2768_p0 = pnand %p2766_p13, %p3158_p8 }
 0x150   : > { %p2769_p1 = pneg %p2768_p0 }
 0x152   : > { %p2774_p2 = pnand %p2772_p3, %p2769_p1 }
 0x154   : > { %2777 = shalt.err (!%p2774_p2)
}
 0x155   : > { %s2778_s26 = scalar_lea.vmem %s575_s20, 16  ;;  %s2785_s0 = scalar_lea.vmem %s575_s20, 32 }
 0x156   : > { %p2779_p5 = scmp.ne.s32.totalorder %s575_s20, %s2778_s26  ;;  %p2786_p10 = scmp.lt.s32.totalorder %s575_s20, %s575_s20 }
 0x157   : > { %p2787_p11 = scmp.lt.s32.totalorder %s2785_s0, %s2778_s26 }
 0x158   : > { %p2781_p7 = pnand %p2779_p5, %p3158_p8 }
 0x159   : > { %p2788_p12 = por %p2787_p11, %p2786_p10 }
 0x15a   : > { %p2782_p9 = pneg %p2781_p7 }
 0x15c   : > { %p2789_p4 = pnand %p2788_p12, %p2782_p9 }
 0x15e   : > { %2792 = shalt.err (!%p2789_p4)
}
 0x15f   : > { %2240 = dma.hbm_to_vmem [thread:$0]  (!%p3144_p6), %s3749_s12, 16, %s575_s20, [#allocation22]  }
 0x160   : > { %s2793_s25 = scalar_lea.hbm %s3751_s14, 16 }
 0x161   : > { %p2794_p13 = scmp.ne.s32.totalorder %s3751_s14, %s2793_s25  ;;  %p2800_p3 = scmp.lt.u32.totalorder %s2793_s25, %s3751_s14 }
 0x163   : > { %p2796_p0 = pnand %p2794_p13, %p3158_p8 }
 0x165   : > { %p2797_p1 = pneg %p2796_p0 }
 0x167   : > { %p2802_p2 = pnand %p2800_p3, %p2797_p1 }
 0x169   : > { %2805 = shalt.err (!%p2802_p2)
}
 0x16a   : > { %s2806_s28 = scalar_lea.vmem %s599_s27, 16  ;;  %s2813_s20 = scalar_lea.vmem %s599_s27, 32 }
 0x16b   : > { %p2807_p5 = scmp.ne.s32.totalorder %s599_s27, %s2806_s28  ;;  %p2814_p10 = scmp.lt.s32.totalorder %s599_s27, %s599_s27 }
 0x16c   : > { %p2815_p11 = scmp.lt.s32.totalorder %s2813_s20, %s2806_s28 }
 0x16d   : > { %p2809_p7 = pnand %p2807_p5, %p3158_p8 }
 0x16e   : > { %p2816_p12 = por %p2815_p11, %p2814_p10 }
 0x16f   : > { %p2810_p9 = pneg %p2809_p7 }
 0x171   : > { %p2817_p4 = pnand %p2816_p12, %p2810_p9 }
 0x173   : > { %2820 = shalt.err (!%p2817_p4)
}
 0x174   : > { %2246 = dma.hbm_to_vmem [thread:$0]  (!%p3144_p6), %s3751_s14, 16, %s599_s27, [#allocation25]  }
 0x175   : > { %s2996_s0 = smov [#allocation29]   ;;  %s2821_s30 = scalar_lea.hbm %s3753_s16, 16 }
 0x176   : > { %s620_s22 = sshll.u32 %s2996_s0, 4  ;;  %p2822_p13 = scmp.ne.s32.totalorder %s3753_s16, %s2821_s30  ;;  %s621_s22 = int_to_ptr.vmem [resolvable:$true] %s620_s22 }
 0x177   : > { %p2828_p3 = scmp.lt.u32.totalorder %s2821_s30, %s3753_s16 }
 0x178   : > { %p2824_p0 = pnand %p2822_p13, %p3158_p8 }
 0x17a   : > { %p2825_p1 = pneg %p2824_p0 }
 0x17c   : > { %p2830_p2 = pnand %p2828_p3, %p2825_p1 }
 0x17e   : > { %2833 = shalt.err (!%p2830_p2)
}
 0x17f   : > { %s2834_s27 = scalar_lea.vmem %s621_s22, 16  ;;  %s2841_s19 = scalar_lea.vmem %s621_s22, 32 }
 0x180   : > { %p2835_p5 = scmp.ne.s32.totalorder %s621_s22, %s2834_s27  ;;  %p2842_p10 = scmp.lt.s32.totalorder %s621_s22, %s621_s22 }
 0x181   : > { %p2843_p11 = scmp.lt.s32.totalorder %s2841_s19, %s2834_s27 }
 0x182   : > { %p2837_p7 = pnand %p2835_p5, %p3158_p8 }
 0x183   : > { %p2844_p12 = por %p2843_p11, %p2842_p10 }
 0x184   : > { %p2838_p9 = pneg %p2837_p7 }
 0x186   : > { %p2845_p4 = pnand %p2844_p12, %p2838_p9 }
 0x188   : > { %2848 = shalt.err (!%p2845_p4)
}
 0x189   : > { %s3788_s21 = sld [smem:[#allocation44_spill]]  ;;  %s3789_s26 = sld [smem:[#allocation43_spill]] }
 0x18a   : > { %s3790_s0 = sld [smem:[#allocation42_spill]]  ;;  %s3791_s18 = sld [smem:[#allocation41_spill]] }
 0x18b   : > { %s3792_s3 = sld [smem:[#allocation45_spill]] }
 0x18c   : > { %2252 = dma.hbm_to_vmem [thread:$0]  (!%p3144_p6), %s3753_s16, 16, %s621_s22, [#allocation28]  }
 0x18f   : > { %s1923_s23 = sadd.s32 4294967294, %s3788_s21   ;;  %s3474_s27 = sadd.s32 1, %s3788_s21  }
 0x190   : > { %s45_s1 = ssub.s32 %s3788_s21, %s3474_s27  ;;  %s48_s30 = sadd.s32 1, %s3789_s26 }
 0x191   : > { %p46_p8 = scmp.eq.s32.totalorder %s45_s1, 0  ;;  %p55_p13 = scmp.ne.s32.totalorder %s3789_s26, %s3790_s0 }
 0x192   : > { %p56_p0 = scmp.eq.s32.totalorder %s3788_s21, 0  ;;  %p61_p1 = scmp.ne.s32.totalorder %s3790_s0, %s3791_s18 }
 0x193   : > { %s3485_s25 = scalar_select %p46_p8, %s3789_s26, %s48_s30  }
 0x194   : > { %p3487_p3 = por %p56_p0, %p55_p13  ;;  %p3794_p2 = scmp.eq.s32.totalorder %s3792_s3, 0 }
 0x195   : > { %p421_p5 = scmp.eq.s32.totalorder %s3792_s3, 1  ;;  %p427_p7 = scmp.eq.s32.totalorder %s1923_s23, 1 }
 0x196   : > { %p3493_p6 = por %p3794_p2, %p61_p1  ;;  %p2277_p9 = scmp.lt.s32.totalorder %s3788_s21, 2 }
 0x197   : > { %s631_s24 = sand.u32 1, %s3789_s26   ;;  %p3500_p10 = por %p421_p5, %p55_p13 }
 0x198   : > { %p3504_p11 = por %p427_p7, %p61_p1  ;;  %s1942_s28 = sshll.u32 %s631_s24, 3 }
 0x199   : > { %s3796_s29 = scalar_select %p3500_p10, 1, 0 }
 0x19a   : > { %s3797_s19 = scalar_select %p3504_p11, 1, 0 }
 0x19b   : > { %s1943_s20 = sshll.u32 %s3788_s21, 7  ;;  %s3798_s1 = sld [smem:[#allocation47_spill]] }
 0x19c   : > { %s635_s26 = scalar_lea.vmem [#allocation3], %s1942_s28  ;;  %p3518_p12 = pnand %p2277_p9, %p3487_p3 }
 0x19d   : > { %s642_s3 = sshll.u32 %s635_s26, 4  ;;  %s632_s21 = scalar_lea.sflag [#allocation4], %s631_s24  ;;  %s3514_s3 = int_to_ptr.vmem [resolvable:$true] %s642_s3 }
 0x19e   : > { %p2851_p8 = pneg %p3518_p12 }
 0x1a1   : > { %s3512_s30 = scalar_lea.hbm %s3798_s1, %s1943_s20  ;;  %s2854_s0 = scalar_lea.hbm %s3798_s1, 256 }
 0x1a2   : > { %s2849_s2 = scalar_lea.hbm %s3512_s30, 128  ;;  %p2855_p1 = scmp.lt.u32.totalorder %s3512_s30, %s3798_s1 }
 0x1a3   : > { %p2850_p4 = scmp.ne.s32.totalorder %s3512_s30, %s2849_s2  ;;  %p2856_p3 = scmp.lt.u32.totalorder %s2854_s0, %s2849_s2 }
 0x1a4   : > { %p2858_p5 = scmp.lt.u32.totalorder %s2849_s2, %s3512_s30 }
 0x1a5   : > { %p2852_p13 = pnand %p2851_p8, %p2850_p4  ;;  %p2857_p2 = por %p2856_p3, %p2855_p1 }
 0x1a7   : > { %p2853_p0 = pneg %p2852_p13  ;;  %p2859_p7 = por %p2858_p5, %p2857_p2 }
 0x1a9   : > { %p2860_p9 = pnand %p2859_p7, %p2853_p0 }
 0x1ab   : > { %2863 = shalt.err (!%p2860_p9)
}
 0x1ac   : > { %s2864_s24 = scalar_lea.vmem %s3514_s3, 128  ;;  %s2997_s26 = smov [#allocation3]  }
 0x1ad   : > { %p2865_p4 = scmp.ne.s32.totalorder %s3514_s3, %s2864_s24  ;;  %s2869_s28 = sshll.u32 %s2997_s26, 4  ;;  %s2870_s28 = int_to_ptr.vmem [resolvable:$false] %s2869_s28 }
 0x1ae   : > { %s2871_s20 = scalar_lea.vmem %s2870_s28, 256  ;;  %p2872_p10 = scmp.lt.s32.totalorder %s3514_s3, %s2870_s28 }
 0x1af   : > { %p2867_p13 = pnand %p2865_p4, %p2851_p8  ;;  %p2873_p1 = scmp.lt.s32.totalorder %s2871_s20, %s2864_s24 }
 0x1b1   : > { %p2868_p11 = pneg %p2867_p13  ;;  %p2874_p3 = por %p2873_p1, %p2872_p10 }
 0x1b3   : > { %p2875_p2 = pnand %p2874_p3, %p2868_p11 }
 0x1b5   : > { %2878 = shalt.err (!%p2875_p2)
}
 0x1b6   : > { %2256 = dma.hbm_to_vmem [thread:$0]  (!%p3518_p12), %s3512_s30, 128, %s3514_s3, %s632_s21  }
 0x1b7   : > { %s3800_s2 = sld [smem:[#allocation46_spill]] }
 0x1bd   : > { %p3801_p0 = scmp.ne.s32.totalorder %s3800_s2, 0 }
 0x1be   : > { %s3802_s0 = sld [smem:[#allocation42_spill]] (!%p3801_p0) }
 0x1bf   : > { %651 = sbr.rel (%p3801_p0) target bundleno = 3687 (0xe67), region = 88 }
 0x1c4   : > { %s3550_s17 = sand.u32 (!%p3801_p0), 1, %s3802_s0  }
 0x1c5   : > { %s1945_s18 = sshll.u32 (!%p3801_p0), %s3550_s17, 3  ;;  %s654_s24 = scalar_lea.sflag (!%p3801_p0), [#allocation4], %s3550_s17 }
 0x1c6   : > { %s657_s26 = scalar_lea.vmem [#allocation3], %s1945_s18 }
 0x1c7   : > { %2924 = dma.done.wait (%p3493_p6), %s654_s24, 128  }
 0x1c8   : > { %2926 = vsyncadd (%p3493_p6), %s654_s24, 4294967168  ;;  %s3803_s30 = sld [smem:[#allocation45_spill]] }
 0x1ce   : > { %p3804_p10 = scmp.eq.s32.totalorder %s3803_s30, 0 }
 0x1d0   : > { %2928 = dma.done.wait (%p3804_p10), [#allocation7], 32   ;;  %p3805_p11 = pmov %p3804_p10 }
 0x1d1   : > { %p3806_p12 = pmov %p3804_p10 }
 0x1d2   : > { %2930 = vsyncadd (%p3805_p11), [#allocation7], 4294967264 }
 0x1d3   : > { %2932 = dma.done.wait (%p3806_p12), [#allocation10], 272   ;;  %p3807_p8 = pmov %p3804_p10 }
 0x1d5   : > { %2934 = vsyncadd (%p3807_p8), [#allocation10], 4294967024  ;;  %p3808_p5 = pmov %p3807_p8 }
 0x1d7   : > { %2936 = dma.done.wait (%p3808_p5), [#allocation13], 272   ;;  %p3809_p7 = pmov %p3808_p5 }
 0x1d8   : > { %p3810_p6 = pmov %p3808_p5 }
 0x1d9   : > { %2938 = vsyncadd (%p3809_p7), [#allocation13], 4294967024 }
 0x1da   : > { %2940 = dma.done.wait (%p3810_p6), [#allocation16], 32   ;;  %p3811_p9 = pmov %p3808_p5 }
 0x1db   : > { %p3812_p4 = pmov %p3808_p5 }
 0x1dc   : > { %2942 = vsyncadd (%p3811_p9), [#allocation16], 4294967264 }
 0x1dd   : > { %2944 = dma.done.wait (%p3812_p4), [#allocation19], 272   ;;  %p3813_p13 = pmov %p3812_p4 }
 0x1de   : > { %p3814_p1 = pmov %p3812_p4 }
 0x1df   : > { %2946 = vsyncadd (%p3813_p13), [#allocation19], 4294967024 }
 0x1e0   : > { %2948 = dma.done.wait (%p3814_p1), [#allocation22], 32   ;;  %p3815_p3 = pmov %p3814_p1 }
 0x1e1   : > { %p3816_p2 = pmov %p3814_p1 }
 0x1e2   : > { %2950 = vsyncadd (%p3815_p3), [#allocation22], 4294967264 }
 0x1e3   : > { %2952 = dma.done.wait (%p3816_p2), [#allocation25], 1040   ;;  %p3817_p0 = pmov %p3814_p1 }
 0x1e5   : > { %2954 = vsyncadd (%p3817_p0), [#allocation25], 4294966256  ;;  %p3818_p10 = pmov %p3817_p0 }
 0x1e6   : > { %p3819_p11 = pmov %p3817_p0 }
 0x1e7   : > { %2956 = dma.done.wait (%p3818_p10), [#allocation28], 32  }
 0x1e8   : > { %2958 = vsyncadd (%p3819_p11), [#allocation28], 4294967264  ;;  %vm776_vm0 = vcmask 261120   ;;  %v773_v0 = vld [vmem:[%s657_s26] sm:$0xff]  ;;  %v2361_v7 = vld [vmem:[#allocation9] sm:$0xff]   ;;  %v2998_v8 = vmov 0.0  }
 0x1e9   : > { %v777_v1 = vsel %vm776_vm0, %v773_v0, 0.0  ;;  %2044 = vmatprep.subr.bf16.mxu0 %v2998_v8  ;;  %2064 = vmatprep.subr.bf16.mxu1 %v2998_v8  ;;  %v2362_v9 = vld [vmem:[#allocation9 + $0x8] sm:$0xff]   ;;  %vm2999_vm1 = vmmov 0   ;;  %v1963_v14 = vld [vmem:[#allocation6] ss:$0 sm:$0xff]  ;;  %s3000_s22 = smov 96  }
 0x1ea   : > { %778 = vadd.xlane.f32.xlu0 %v777_v1  ;;  %2045 = vmatpush3.bf16.msra.mxu0 %v2361_v7  ;;  %v1964_v16 = vld [vmem:[#allocation8] ss:$0 sm:$0xff]  ;;  %v1965_v20 = vld [vmem:[#allocation11] ss:$0 sm:$0xff]  ;;  %s3001_s3 = smov 120   ;;  %s3002_s23 = smov 88  }
 0x1eb   : > { %2048 = vmatprep.mubr.msk.bf16.mxu0 %vm2999_vm1, %v2998_v8  ;;  %2046 = vmatprep.subr.bf16.mxu0 %v2998_v8  ;;  %s3003_s21 = smov 80   ;;  %s3004_s28 = smov 112   ;;  %vm878_vm2 = vcmask 64512   ;;  %vm942_vm3 = vcmask 1043456   ;;  %vm987_vm4 = vcmask 60416   ;;  %vm1107_vm5 = vcmask 126016  }
 0x1ec   : > { %2066 = vmatprep.mubr.msk.bf16.mxu1 %vm2999_vm1, %v2998_v8  ;;  %s3005_s20 = smov 72   ;;  %s3006_s2 = smov 104   ;;  %vm1226_vm6 = vcmask 191616   ;;  %vm1345_vm7 = vcmask 257216  }
 0x1ed   : > { %s3007_s0 = smov 64   ;;  %s3008_s24 = smov 56  }
 0x1ee   : > { %2047 = vmatpush3.bf16.msra.mxu0 %v2362_v9  ;;  %s3009_s26 = smov 48   ;;  %p3822_p8 = scmp.ne.s32.totalorder %s3796_s29, 0 }
 0x1ef   : > { %2052 = vmatprep.subr.bf16.mxu0 %v2998_v8 }
 0x277   : > { %v779_v2 = vpop.xlane.xlu0 %778 }
 0x278   : > { %v781_v3 = vmul.f32 0.03125, %v779_v2 }
 0x27a   : > { %v782_v4 = vsub.f32 %v773_v0, %v781_v3 }
 0x27c   : > { %v783_v5 = vmul.f32 %v782_v4, %v782_v4 }
 0x27e   : > { %v784_v6 = vsel %vm776_vm0, %v783_v5, 0.0 }
 0x27f   : > { %785 = vadd.xlane.f32.xlu0 %v784_v6 }
 0x30c   : > { %v786_v10 = vpop.xlane.xlu0 %785 }
 0x30d   : > { %v787_v11 = vmul.f32 0.03125, %v786_v10 }
 0x30f   : > { %v788_v12 = vadd.f32 1e-05, %v787_v11 }
 0x311   : > { %2375 = vrsqrt.f32 %v788_v12 }
 0x31b   : > { %v2376_v13 = vpop.eup %2375 }
 0x31c   : > { %v790_v15 = vmul.f32 %v2376_v13, %v782_v4 }
 0x31e   : > { %v797_v17 = vmul.f32 %v1963_v14, %v790_v15 }
 0x320   : > { %v3602_v18 = vadd.f32 %v1964_v16, %v797_v17 }
 0x322   : > { %v805_v19 = vpack.c.bf16 %v3602_v18, %v3602_v18 }
 0x324   : > { %2049 = vmatmul.mubr.msk.bf16.vlgmr.msra.gmra.mrb[0].mxu0 %vm776_vm0, %v805_v19 }
 0x325   : > { %2054 = vmatprep.mubr.msk.bf16.mxu0 %vm2999_vm1, %v2998_v8 }
 0x3f7   : > { %v866_v21 = vpop.f32.mrb[0].mxu0 }
 0x3f8   : > { %v867_v22 = vadd.f32 %v1965_v20, %v866_v21  ;;  %v2050_v23 = vpop.f32.mrb[1].mxu0 }
 0x3f9   : > { %v869_v24 = vpop.f32.mrb[2].mxu0 }
 0x3fa   : > { %v872_v25 = vmul.f32 0.35355338, %v867_v22  ;;  %v3609_v26 = vpack.c.bf16 %v867_v22, %v867_v22  ;;  %v2051_v27 = vpop.f32.mrb[3].mxu0 }
 0x3fc   : > { %v873_v28 = vpack.c.bf16 %v872_v25, %v872_v25  ;;  %876 = vrot.lane.b32.xlu1 %v3609_v26, %s3000_s22  ;;  %s3010_s22 = smov 40  }
 0x3fe   : > { %990 = vrot.lane.b32.xlu0 %v873_v28, %s3001_s3  ;;  %s3011_s3 = smov 8  }
 0x400   : > { %992 = vrot.lane.b32.xlu1 %v3609_v26, %s3002_s23  ;;  %s3012_s23 = smov 16  }
 0x404   : > { %1111 = vrot.lane.b32.xlu1 %v3609_v26, %s3003_s21  ;;  %s3013_s21 = smov 24  }
 0x408   : > { %1109 = vrot.lane.b32.xlu1 %v873_v28, %s3004_s28  ;;  %s2004_s28 = sshll.u32 %s3803_s30, 7 }
 0x40c   : > { %1230 = vrot.lane.b32.xlu1 %v3609_v26, %s3005_s20  ;;  %s771_s20 = scalar_lea.vmem [#allocation30], %s1945_s18  ;;  %s3014_s18 = smov [#allocation30]  }
 0x40d   : > { %s2883_s30 = sshll.u32 %s3014_s18, 4  ;;  %s2884_s30 = int_to_ptr.vmem [resolvable:$false] %s2883_s30 }
 0x40e   : > { %s2885_s1 = scalar_lea.vmem %s2884_s30, 256 }
 0x410   : > { %1228 = vrot.lane.b32.xlu1 %v873_v28, %s3006_s2  ;;  %s1701_s2 = sshll.u32 %s771_s20, 4  ;;  %s3694_s2 = int_to_ptr.vmem [resolvable:$true] %s1701_s2 }
 0x411   : > { %p2886_p6 = scmp.lt.s32.totalorder %s3694_s2, %s2884_s30 }
 0x46e   : > { %v877_v29 = vpop.permute.xlu1 %876 }
 0x46f   : > { %v883_v30 = vsel %vm878_vm2, %v877_v29, 0 }
 0x470   : > { %2053 = vmatpush3.bf16.xpose.msra.mxu0 %v883_v30  ;;  %v991_v34 = vpop.permute.xlu0 %990 }
 0x471   : > { %2058 = vmatprep.subr.bf16.mxu0 %v2998_v8 }
 0x472   : > { %v993_v31 = vpop.permute.xlu1 %992 }
 0x473   : > { %v998_v32 = vsel %vm878_vm2, %v993_v31, 0 }
 0x474   : > { %2065 = vmatpush3.bf16.xpose.msra.mxu1 %v998_v32 }
 0x475   : > { %2076 = vmatprep.subr.bf16.mxu1 %v2998_v8 }
 0x476   : > { %v1112_v33 = vpop.permute.xlu1 %1111 }
 0x477   : > { %2055 = vmatmul.mubr.msk.bf16.vlgmr.msra.gmra.mrb[4].mxu0 %vm878_vm2, %v873_v28  ;;  %v1117_v36 = vsel %vm878_vm2, %v1112_v33, 0 }
 0x478   : > { %2060 = vmatprep.mubr.msk.bf16.mxu0 %vm2999_vm1, %v2998_v8 }
 0x47a   : > { %v1110_v35 = vpop.permute.xlu1 %1109 }
 0x47b   : > { %2067 = vmatmul.mubr.msk.bf16.vlgmr.msra.gmra.mrb[0].mxu1 %vm878_vm2, %v991_v34 }
 0x47c   : > { %2077 = vmatpush3.bf16.xpose.msra.mxu1 %v1117_v36  ;;  %2078 = vmatprep.mubr.msk.bf16.mxu1 %vm2999_vm1, %v2998_v8 }
 0x47d   : > { %2088 = vmatprep.subr.bf16.mxu1 %v2998_v8 }
 0x47e   : > { %v1231_v37 = vpop.permute.xlu1 %1230 }
 0x47f   : > { %v1236_v38 = vsel %vm878_vm2, %v1231_v37, 0 }
 0x482   : > { %v1229_v39 = vpop.permute.xlu1 %1228 }
 0x483   : > { %2079 = vmatmul.mubr.msk.bf16.vlgmr.msra.gmra.mrb[4].mxu1 %vm878_vm2, %v1110_v35 }
 0x484   : > { %2089 = vmatpush3.bf16.xpose.msra.mxu1 %v1236_v38  ;;  %2090 = vmatprep.mubr.msk.bf16.mxu1 %vm2999_vm1, %v2998_v8 }
 0x485   : > { %2100 = vmatprep.subr.bf16.mxu1 %v2998_v8 }
 0x48b   : > { %2091 = vmatmul.mubr.msk.bf16.vlgmr.msra.gmra.mrb[8].mxu1 %vm878_vm2, %v1229_v39 }
 0x48c   : > { %2104 = vmatprep.mubr.msk.bf16.mxu1 %vm2999_vm1, %v2998_v8 }
 0x54a   : > { %v919_v40 = vpop.f32.mrb[4].mxu0 }
 0x54b   : > { %v2056_v41 = vpop.f32.mrb[5].mxu0  ;;  %v925_v42 = vsel %vm878_vm2, %v919_v40, -inf }
 0x54c   : > { %926 = vmax.xlane.f32.xlu1 %v925_v42  ;;  %v922_v43 = vpop.f32.mrb[6].mxu0 }
 0x54d   : > { %v2057_v44 = vpop.f32.mrb[7].mxu0 }
 0x54e   : > { %v1034_v45 = vpop.f32.mrb[0].mxu1 }
 0x54f   : > { %v2068_v46 = vpop.f32.mrb[1].mxu1  ;;  %v1040_v47 = vsel %vm878_vm2, %v1034_v45, -inf }
 0x550   : > { %1041 = vmax.xlane.f32.xlu0 %v1040_v47  ;;  %v1037_v48 = vpop.f32.mrb[2].mxu1 }
 0x551   : > { %v2069_v49 = vpop.f32.mrb[3].mxu1 }
 0x556   : > { %v1153_v50 = vpop.f32.mrb[4].mxu1 }
 0x557   : > { %v2080_v51 = vpop.f32.mrb[5].mxu1  ;;  %v1159_v52 = vsel %vm878_vm2, %v1153_v50, -inf }
 0x558   : > { %v1156_v53 = vpop.f32.mrb[6].mxu1  ;;  %1160 = vmax.xlane.f32.xlu1 %v1159_v52  ;;  %v2363_v52 = vld [vmem:[#allocation12] sm:$0xff]  }
 0x559   : > { %v2081_v54 = vpop.f32.mrb[7].mxu1  ;;  %2101 = vmatpush3.bf16.msra.mxu1 %v2363_v52  ;;  %v1990_v52 = vld [vmem:[#allocation21] ss:$0 sm:$0xff] }
 0x55a   : > { %v2364_v54 = vld [vmem:[#allocation12 + $0x8] sm:$0xff]   ;;  %2102 = vmatprep.subr.bf16.mxu1 %v2998_v8 }
 0x55d   : > { %2103 = vmatpush3.bf16.msra.mxu1 %v2364_v54  ;;  %v1991_v54 = vld [vmem:[#allocation23] ss:$0 sm:$0xff] }
 0x55e   : > { %v1272_v55 = vpop.f32.mrb[8].mxu1  ;;  %2116 = vmatprep.subr.bf16.mxu1 %v2998_v8 }
 0x55f   : > { %v2092_v56 = vpop.f32.mrb[9].mxu1  ;;  %v1278_v57 = vsel %vm878_vm2, %v1272_v55, -inf }
 0x560   : > { %1279 = vmax.xlane.f32.xlu0 %v1278_v57  ;;  %v1275_v58 = vpop.f32.mrb[10].mxu1 }
 0x561   : > { %v2093_v59 = vpop.f32.mrb[11].mxu1 }
 0x5d9   : > { %v927_v60 = vpop.xlane.xlu1 %926 }
 0x5da   : > { %v928_v61 = vsub.f32 %v919_v40, %v927_v60 }
 0x5dc   : > { %v929_v62 = vmul.f32 1.442695, %v928_v61 }
 0x5dd   : > { %v1042_v63 = vpop.xlane.xlu0 %1041 }
 0x5de   : > { %2377 = vpow2.f32 %v929_v62  ;;  %v1043_v0 = vsub.f32 %v1034_v45, %v1042_v63 }
 0x5e0   : > { %v1044_v1 = vmul.f32 1.442695, %v1043_v0 }
 0x5e2   : > { %2379 = vpow2.f32 %v1044_v1 }
 0x5e5   : > { %v1161_v12 = vpop.xlane.xlu1 %1160 }
 0x5e6   : > { %v1162_v13 = vsub.f32 %v1153_v50, %v1161_v12 }
 0x5e8   : > { %v2378_v2 = vpop.eup %2377  ;;  %v1163_v14 = vmul.f32 1.442695, %v1162_v13 }
 0x5e9   : > { %v931_v3 = vsel %vm878_vm2, %v2378_v2, 0.0 }
 0x5ea   : > { %932 = vadd.xlane.f32.xlu1 %v931_v3 }
 0x5ec   : > { %v2380_v4 = vpop.eup %2379 }
 0x5ed   : > { %v1280_v5 = vpop.xlane.xlu0 %1279  ;;  %v1046_v6 = vsel %vm878_vm2, %v2380_v4, 0.0 }
 0x5ee   : > { %v1281_v7 = vsub.f32 %v1272_v55, %v1280_v5  ;;  %1047 = vadd.xlane.f32.xlu0 %v1046_v6 }
 0x5f0   : > { %v1282_v9 = vmul.f32 1.442695, %v1281_v7 }
 0x5f2   : > { %2381 = vpow2.f32 %v1282_v9 }
 0x5f3   : > { %2383 = vpow2.f32 %v1163_v14 }
 0x5fb   : > { %937 = vrot.lane.b32.xlu1 %v3609_v26, %s3007_s0 }
 0x5fc   : > { %v2382_v10 = vpop.eup %2381 }
 0x5fd   : > { %v1284_v11 = vsel %vm878_vm2, %v2382_v10, 0.0  ;;  %v2384_v15 = vpop.eup %2383 }
 0x5fe   : > { %1285 = vadd.xlane.f32.xlu0 %v1284_v11  ;;  %v1165_v16 = vsel %vm878_vm2, %v2384_v15, 0.0 }
 0x614   : > { %1052 = vrot.lane.b32.xlu0 %v3609_v26, %s3008_s24 }
 0x61f   : > { %1166 = vadd.xlane.f32.xlu1 %v1165_v16 }
 0x630   : > { %1171 = vrot.lane.b32.xlu1 %v3609_v26, %s3009_s26  ;;  %s3820_s26 = sld [smem:[#allocation51_spill]] }
 0x634   : > { %1290 = vrot.lane.b32.xlu1 %v3609_v26, %s3010_s22 }
 0x636   : > { %s3821_s22 = smov %s3820_s26 }
 0x677   : > { %v933_v17 = vpop.xlane.xlu1 %932 }
 0x678   : > { %2385 = vrcp.f32 %v933_v17 }
 0x67b   : > { %v938_v19 = vpop.permute.xlu1 %937  ;;  %v1048_v21 = vpop.xlane.xlu0 %1047 }
 0x67c   : > { %v944_v20 = vsel %vm942_vm3, %v938_v19, 0  ;;  %2387 = vrcp.f32 %v1048_v21  ;;  %v2365_v19 = vld [vmem:[#allocation18] sm:$0xff]  }
 0x67d   : > { %2059 = vmatpush3.bf16.msra.mxu0 %v944_v20  ;;  %v2366_v20 = vld [vmem:[#allocation18 + $0x8] sm:$0xff]  }
 0x67e   : > { %2070 = vmatprep.subr.bf16.mxu0 %v2998_v8 }
 0x682   : > { %v2386_v22 = vpop.eup %2385 }
 0x683   : > { %v935_v23 = vmul.f32 %v2386_v22, %v2378_v2 }
 0x685   : > { %v936_v24 = vpack.c.bf16 %v935_v23, %v935_v23 }
 0x686   : > { %v2388_v25 = vpop.eup %2387 }
 0x687   : > { %2061 = vmatmul.mubr.msk.bf16.vlgmr.msra.gmra.mrb[8].mxu0 %vm878_vm2, %v936_v24  ;;  %v1050_v27 = vmul.f32 %v2388_v25, %v2380_v4  ;;  %v1980_v4 = vld [vmem:[#allocation14] ss:$0 sm:$0xff]  ;;  %v1984_v24 = vld [vmem:[#allocation15] ss:$0 sm:$0xff] }
 0x688   : > { %2072 = vmatprep.mubr.msk.bf16.mxu0 %vm2999_vm1, %v2998_v8 }
 0x689   : > { %v1051_v30 = vpack.c.bf16 %v1050_v27, %v1050_v27 }
 0x68b   : > { %v1286_v26 = vpop.xlane.xlu0 %1285 }
 0x68f   : > { %v1053_v28 = vpop.permute.xlu0 %1052 }
 0x690   : > { %v1058_v29 = vsel %vm942_vm3, %v1053_v28, 0 }
 0x691   : > { %2071 = vmatpush3.bf16.msra.mxu0 %v1058_v29 }
 0x692   : > { %2082 = vmatprep.subr.bf16.mxu0 %v2998_v8 }
 0x694   : > { %2073 = vmatmul.mubr.msk.bf16.vlgmr.msra.gmra.mrb[12].mxu0 %vm878_vm2, %v1051_v30  ;;  %v1986_v30 = vld [vmem:[#allocation20] ss:$0 sm:$0xff] }
 0x695   : > { %2084 = vmatprep.mubr.msk.bf16.mxu0 %vm2999_vm1, %v2998_v8 }
 0x6ac   : > { %v1167_v31 = vpop.xlane.xlu1 %1166 }
 0x6ad   : > { %2389 = vrcp.f32 %v1167_v31 }
 0x6ae   : > { %2391 = vrcp.f32 %v1286_v26  ;;  %v1985_v26 = vld [vmem:[#allocation17] ss:$0 sm:$0xff] }
 0x6b0   : > { %v1172_v32 = vpop.permute.xlu1 %1171 }
 0x6b1   : > { %v1177_v33 = vsel %vm942_vm3, %v1172_v32, 0 }
 0x6b2   : > { %2083 = vmatpush3.bf16.msra.mxu0 %v1177_v33 }
 0x6b3   : > { %2094 = vmatprep.subr.bf16.mxu0 %v2998_v8 }
 0x6b4   : > { %v1291_v36 = vpop.permute.xlu1 %1290 }
 0x6b5   : > { %v1296_v39 = vsel %vm942_vm3, %v1291_v36, 0 }
 0x6b7   : > { %v2390_v34 = vpop.eup %2389 }
 0x6b8   : > { %v1169_v35 = vmul.f32 %v2390_v34, %v2384_v15  ;;  %v2392_v38 = vpop.eup %2391 }
 0x6b9   : > { %v1288_v40 = vmul.f32 %v2392_v38, %v2382_v10 }
 0x6ba   : > { %v1170_v37 = vpack.c.bf16 %v1169_v35, %v1169_v35 }
 0x6bb   : > { %v1289_v41 = vpack.c.bf16 %v1288_v40, %v1288_v40  ;;  %v2367_v40 = vld [vmem:[#allocation24] sm:$0xff]  }
 0x6bc   : > { %2085 = vmatmul.mubr.msk.bf16.vlgmr.msra.gmra.mrb[16].mxu0 %vm878_vm2, %v1170_v37 }
 0x6bd   : > { %2095 = vmatpush3.bf16.msra.mxu0 %v1296_v39  ;;  %2096 = vmatprep.mubr.msk.bf16.mxu0 %vm2999_vm1, %v2998_v8 }
 0x6be   : > { %2108 = vmatprep.subr.bf16.mxu0 %v2998_v8 }
 0x6c4   : > { %2097 = vmatmul.mubr.msk.bf16.vlgmr.msra.gmra.mrb[20].mxu0 %vm878_vm2, %v1289_v41  ;;  %v2368_v41 = vld [vmem:[#allocation24 + $0x8] sm:$0xff]  }
 0x6c5   : > { %2112 = vmatprep.mubr.msk.bf16.mxu0 %vm2999_vm1, %v2998_v8  ;;  %2109 = vmatpush3.bf16.msra.mxu0 %v2365_v19  ;;  %v2002_v19 = vld [vmem:[#allocation29] ss:$0 sm:$0xff] }
 0x6c6   : > { %2110 = vmatprep.subr.bf16.mxu0 %v2998_v8 }
 0x6c9   : > { %2111 = vmatpush3.bf16.msra.mxu0 %v2366_v20 }
 0x75a   : > { %v980_v42 = vpop.f32.mrb[8].mxu0 }
 0x75b   : > { %v986_v43 = vpack.c.bf16 %v980_v42, %v980_v42  ;;  %v2062_v44 = vpop.f32.mrb[9].mxu0  ;;  %v2369_v42 = vld [vmem:[#allocation24 + $0x10] sm:$0xff]  }
 0x75c   : > { %v983_v45 = vpop.f32.mrb[10].mxu0  ;;  %v2371_v44 = vld [vmem:[#allocation24 + $0x20] sm:$0xff]  }
 0x75d   : > { %988 = vst.msk [vmem:[#allocation2] sm:$0xf] %vm987_vm4, %v986_v43  ;;  %v2063_v46 = vpop.f32.mrb[11].mxu0  ;;  %v2370_v43 = vld [vmem:[#allocation24 + $0x18] sm:$0xff]   ;;  %v2372_v45 = vld [vmem:[#allocation24 + $0x28] sm:$0xff]  }
 0x75e   : > { %v2373_v46 = vld [vmem:[#allocation24 + $0x30] sm:$0xff]  }
 0x767   : > { %v1094_v47 = vpop.f32.mrb[12].mxu0 }
 0x768   : > { %v2007_v48 = vpack.c.bf16 %v1094_v47, %v1094_v47  ;;  %v2074_v49 = vpop.f32.mrb[13].mxu0  ;;  %v2374_v47 = vld [vmem:[#allocation24 + $0x38] sm:$0xff]  }
 0x769   : > { %v1097_v50 = vpop.f32.mrb[14].mxu0 }
 0x76a   : > { %1104 = vrot.lane.b32.xlu0 %v2007_v48, %s3011_s3  ;;  %v2075_v51 = vpop.f32.mrb[15].mxu0  ;;  %s3692_s3 = scalar_lea.hbm %s3820_s26, %s2004_s28 }
 0x78f   : > { %v1213_v53 = vpop.f32.mrb[16].mxu0 }
 0x790   : > { %v2008_v55 = vpack.c.bf16 %v1213_v53, %v1213_v53  ;;  %v2086_v56 = vpop.f32.mrb[17].mxu0 }
 0x791   : > { %v1216_v57 = vpop.f32.mrb[18].mxu0 }
 0x792   : > { %1223 = vrot.lane.b32.xlu1 %v2008_v55, %s3012_s23  ;;  %v2087_v58 = vpop.f32.mrb[19].mxu0  ;;  %s1688_s23 = scalar_lea.sflag [#allocation5], %s3550_s17 }
 0x797   : > { %v1332_v59 = vpop.f32.mrb[20].mxu0 }
 0x798   : > { %v2009_v60 = vpack.c.bf16 %v1332_v59, %v1332_v59  ;;  %v2098_v61 = vpop.f32.mrb[21].mxu0 }
 0x799   : > { %v1335_v62 = vpop.f32.mrb[22].mxu0 }
 0x79a   : > { %1342 = vrot.lane.b32.xlu0 %v2009_v60, %s3013_s21  ;;  %v2099_v63 = vpop.f32.mrb[23].mxu0  ;;  %s2879_s21 = scalar_lea.vmem %s3694_s2, 128 }
 0x79b   : > { %p2880_p12 = scmp.ne.s32.totalorder %s3694_s2, %s2879_s21  ;;  %p2887_p9 = scmp.lt.s32.totalorder %s2885_s1, %s2879_s21 }
 0x79d   : > { %p2881_p5 = pnand %p2880_p12, %p3822_p8  ;;  %p2888_p4 = por %p2887_p9, %p2886_p6 }
 0x79f   : > { %p2882_p7 = pneg %p2881_p5 }
 0x7a1   : > { %p2889_p13 = pnand %p2888_p4, %p2882_p7 }
 0x7dc   : > { %v1105_v0 = vpop.permute.xlu0 %1104 }
 0x7dd   : > { %1108 = vst.msk [vmem:[#allocation2] sm:$0xf] %vm1107_vm5, %v1105_v0 }
 0x804   : > { %v1224_v1 = vpop.permute.xlu1 %1223 }
 0x805   : > { %1227 = vst.msk [vmem:[#allocation2] sm:$0xf] %vm1226_vm6, %v1224_v1 }
 0x80c   : > { %v1343_v2 = vpop.permute.xlu0 %1342 }
 0x80d   : > { %1346 = vst.msk [vmem:[#allocation2] sm:$0xf] %vm1345_vm7, %v1343_v2 }
 0x814   : > { %v1347_v3 = vld [vmem:[#allocation2] sm:$0xf] }
 0x815   : > { %2105 = vmatmul.mubr.msk.bf16.vlgmr.msra.gmra.mrb[12].mxu1 %vm776_vm0, %v1347_v3 }
 0x816   : > { %2132 = vmatprep.mubr.msk.bf16.mxu1 %vm2999_vm1, %v2998_v8  ;;  %2117 = vmatpush3.bf16.msra.mxu1 %v2367_v40 }
 0x817   : > { %2118 = vmatprep.subr.bf16.mxu1 %v2998_v8 }
 0x81a   : > { %2119 = vmatpush3.bf16.msra.mxu1 %v2368_v41 }
 0x81b   : > { %2120 = vmatprep.subr.bf16.mxu1 %v2998_v8 }
 0x81e   : > { %2121 = vmatpush3.bf16.msra.mxu1 %v2369_v42 }
 0x81f   : > { %2122 = vmatprep.subr.bf16.mxu1 %v2998_v8 }
 0x822   : > { %2123 = vmatpush3.bf16.msra.mxu1 %v2370_v43 }
 0x823   : > { %2124 = vmatprep.subr.bf16.mxu1 %v2998_v8 }
 0x826   : > { %2125 = vmatpush3.bf16.msra.mxu1 %v2371_v44 }
 0x827   : > { %2126 = vmatprep.subr.bf16.mxu1 %v2998_v8 }
 0x82a   : > { %2127 = vmatpush3.bf16.msra.mxu1 %v2372_v45 }
 0x82b   : > { %2128 = vmatprep.subr.bf16.mxu1 %v2998_v8 }
 0x82e   : > { %2129 = vmatpush3.bf16.msra.mxu1 %v2373_v46 }
 0x82f   : > { %2130 = vmatprep.subr.bf16.mxu1 %v2998_v8  ;;  %v1992_v8 = vld [vmem:[#allocation26] ss:$0 sm:$0xff] }
 0x832   : > { %2131 = vmatpush3.bf16.msra.mxu1 %v2374_v47 }
 0x8e8   : > { %v1408_v5 = vpop.f32.mrb[12].mxu1 }
 0x8e9   : > { %v1409_v6 = vadd.f32 %v1980_v4, %v1408_v5  ;;  %v2106_v7 = vpop.f32.mrb[13].mxu1 }
 0x8ea   : > { %v1411_v9 = vpop.f32.mrb[14].mxu1 }
 0x8eb   : > { %v2107_v10 = vpop.f32.mrb[15].mxu1  ;;  %v1414_v11 = vadd.f32 %v1409_v6, %v3602_v18 }
 0x8ed   : > { %v1417_v12 = vsel %vm776_vm0, %v1414_v11, 0.0 }
 0x8ee   : > { %1418 = vadd.xlane.f32.xlu1 %v1417_v12 }
 0x97b   : > { %v1419_v13 = vpop.xlane.xlu1 %1418 }
 0x97c   : > { %v1420_v14 = vmul.f32 0.03125, %v1419_v13 }
 0x97e   : > { %v1421_v15 = vsub.f32 %v1414_v11, %v1420_v14 }
 0x980   : > { %v1422_v16 = vmul.f32 %v1421_v15, %v1421_v15 }
 0x982   : > { %v1423_v17 = vsel %vm776_vm0, %v1422_v16, 0.0  ;;  %v2001_v16 = vld [vmem:[#allocation27] ss:$0 sm:$0xff] }
 0x983   : > { %1424 = vadd.xlane.f32.xlu0 %v1423_v17 }
 0xa10   : > { %v1425_v21 = vpop.xlane.xlu0 %1424 }
 0xa11   : > { %v1426_v22 = vmul.f32 0.03125, %v1425_v21 }
 0xa13   : > { %v1427_v23 = vadd.f32 1e-05, %v1426_v22 }
 0xa15   : > { %2393 = vrsqrt.f32 %v1427_v23 }
 0xa1f   : > { %v2394_v18 = vpop.eup %2393 }
 0xa20   : > { %v1429_v25 = vmul.f32 %v2394_v18, %v1421_v15 }
 0xa22   : > { %v1436_v27 = vmul.f32 %v1984_v24, %v1429_v25 }
 0xa24   : > { %v1443_v28 = vadd.f32 %v1985_v26, %v1436_v27 }
 0xa26   : > { %v1444_v29 = vpack.c.bf16 %v1443_v28, %v1443_v28 }
 0xa28   : > { %2113 = vmatmul.mubr.msk.bf16.vlgmr.msra.gmra.mrb[24].mxu0 %vm776_vm0, %v1444_v29 }
 0xafb   : > { %v1505_v31 = vpop.f32.mrb[24].mxu0 }
 0xafc   : > { %v1506_v32 = vadd.f32 %v1986_v30, %v1505_v31  ;;  %v2114_v33 = vpop.f32.mrb[25].mxu0 }
 0xafd   : > { %v1508_v34 = vpop.f32.mrb[26].mxu0 }
 0xafe   : > { %1513 = vadd.xlane.f32.xlu0 %v1506_v32  ;;  %v2115_v35 = vpop.f32.mrb[27].mxu0 }
 0xb8b   : > { %v1514_v36 = vpop.xlane.xlu0 %1513 }
 0xb8c   : > { %v1516_v37 = vmul.f32 0.0078125, %v1514_v36 }
 0xb8e   : > { %v1517_v38 = vsub.f32 %v1506_v32, %v1516_v37 }
 0xb90   : > { %v1518_v39 = vmul.f32 %v1517_v38, %v1517_v38 }
 0xb92   : > { %1519 = vadd.xlane.f32.xlu1 %v1518_v39 }
 0xc1f   : > { %v1520_v48 = vpop.xlane.xlu1 %1519 }
 0xc20   : > { %v1521_v49 = vmul.f32 0.0078125, %v1520_v48 }
 0xc22   : > { %v1522_v50 = vadd.f32 1e-05, %v1521_v49 }
 0xc24   : > { %2395 = vrsqrt.f32 %v1522_v50 }
 0xc2e   : > { %v2396_v51 = vpop.eup %2395 }
 0xc2f   : > { %v1524_v53 = vmul.f32 %v2396_v51, %v1517_v38 }
 0xc31   : > { %v1531_v55 = vmul.f32 %v1990_v52, %v1524_v53 }
 0xc33   : > { %v1538_v56 = vadd.f32 %v1991_v54, %v1531_v55 }
 0xc35   : > { %v1540_v57 = vmul.f32 0.70710677, %v1538_v56  ;;  %v1539_v59 = vmul.f32 0.5, %v1538_v56 }
 0xc37   : > { %2397 = verf.f32 %v1540_v57 }
 0xc41   : > { %v2398_v58 = vpop.eup %2397 }
 0xc42   : > { %v1542_v60 = vadd.f32 1.0, %v2398_v58 }
 0xc44   : > { %v1543_v61 = vmul.f32 %v1542_v60, %v1539_v59 }
 0xc46   : > { %v1544_v62 = vpack.c.bf16 %v1543_v61, %v1543_v61 }
 0xc48   : > { %2133 = vmatmul.mubr.bf16.vlgmr.msra.gmra.mrb[16].mxu1 %v1544_v62 }
 0xd1b   : > { %v1650_v63 = vpop.f32.mrb[16].mxu1 }
 0xd1c   : > { %v1651_v0 = vadd.f32 %v1992_v8, %v1650_v63  ;;  %v2134_v1 = vpop.f32.mrb[17].mxu1 }
 0xd1d   : > { %v1653_v2 = vpop.f32.mrb[18].mxu1 }
 0xd1e   : > { %v2135_v3 = vpop.f32.mrb[19].mxu1  ;;  %v1656_v4 = vadd.f32 %v1651_v0, %v1443_v28 }
 0xd20   : > { %v1659_v5 = vsel %vm776_vm0, %v1656_v4, 0.0 }
 0xd21   : > { %1660 = vadd.xlane.f32.xlu0 %v1659_v5 }
 0xdae   : > { %v1661_v6 = vpop.xlane.xlu0 %1660 }
 0xdaf   : > { %v1662_v7 = vmul.f32 0.03125, %v1661_v6 }
 0xdb1   : > { %v1663_v9 = vsub.f32 %v1656_v4, %v1662_v7 }
 0xdb3   : > { %v1664_v10 = vmul.f32 %v1663_v9, %v1663_v9 }
 0xdb5   : > { %v1665_v11 = vsel %vm776_vm0, %v1664_v10, 0.0 }
 0xdb6   : > { %1666 = vadd.xlane.f32.xlu1 %v1665_v11 }
 0xe43   : > { %v1667_v12 = vpop.xlane.xlu1 %1666 }
 0xe44   : > { %v1668_v13 = vmul.f32 0.03125, %v1667_v12 }
 0xe46   : > { %v1669_v14 = vadd.f32 1e-05, %v1668_v13 }
 0xe48   : > { %2399 = vrsqrt.f32 %v1669_v14 }
 0xe52   : > { %v2400_v15 = vpop.eup %2399 }
 0xe53   : > { %v1671_v17 = vmul.f32 %v2400_v15, %v1663_v9 }
 0xe55   : > { %v1678_v20 = vmul.f32 %v2001_v16, %v1671_v17 }
 0xe57   : > { %v1685_v21 = vadd.f32 %v2002_v19, %v1678_v20 }
 0xe59   : > { %1686 = vst.msk [vmem:[%s771_s20] sm:$0xff] %vm776_vm0, %v1685_v21 }
 0xe5a   : > { %2892 = shalt.err (!%p2889_p13)
}
 0xe5b   : > { %s2893_s17 = scalar_lea.hbm %s3692_s3, 128  ;;  %s2897_s0 = scalar_lea.hbm %s3821_s22, 256 }
 0xe5c   : > { %p2894_p1 = scmp.ne.s32.totalorder %s3692_s3, %s2893_s17  ;;  %p2898_p0 = scmp.lt.u32.totalorder %s3692_s3, %s3821_s22 }
 0xe5d   : > { %p2899_p10 = scmp.lt.u32.totalorder %s2897_s0, %s2893_s17  ;;  %p2901_p12 = scmp.lt.u32.totalorder %s2893_s17, %s3692_s3 }
 0xe5e   : > { %p2895_p3 = pnand %p2894_p1, %p3822_p8 }
 0xe5f   : > { %p2900_p11 = por %p2899_p10, %p2898_p0 }
 0xe60   : > { %p2896_p2 = pneg %p2895_p3 }
 0xe61   : > { %p2902_p5 = por %p2901_p12, %p2900_p11 }
 0xe63   : > { %p2903_p7 = pnand %p2902_p5, %p2896_p2 }
 0xe65   : > { %2906 = shalt.err (!%p2903_p7)
}
 0xe66   : > { %2202 = dma.vmem_to_hbm [thread:$0]  (%p3822_p8), %s3694_s2, 128, %s3692_s3, %s1688_s23  }
 0xe67 PF: > { %s3823_s1 = sld [smem:[#allocation41_spill]]  ;;  %s3824_s21 = sld [smem:[#allocation44_spill]] }
 0xe68   : > { %p3825_p6 = scmp.ne.s32.totalorder %s3797_s19, 0 }
 0xe6d   : > { %s1713_s18 = sand.u32 1, %s3823_s1   ;;  %p3826_p9 = scmp.ge.s32.totalorder %s3824_s21, 2 }
 0xe6e   : > { %s1714_s30 = scalar_lea.sflag [#allocation5], %s1713_s18 }
 0xe6f   : > { %p2258_p4 = pnand %p3826_p9, %p3825_p6 }
 0xe71   : > { %2960 = dma.done.wait (!%p2258_p4), %s1714_s30, 128  }
 0xe72   : > { %2962 = vsyncadd (!%p2258_p4), %s1714_s30, 4294967168  ;;  %s3827_s24 = sld [smem:[#allocation42_spill]]  ;;  %s3828_s17 = sld [smem:[#allocation43_spill]] }
 0xe73   : > { %s3829_s28 = smov %s3485_s25  ;;  %p38_p13 = scmp.ge.s32.totalorder %s3474_s27, 4  }
 0xe74   : > { %s3831_s26 = smov %s3829_s28 }
 0xe75   :  { %40 = sbr.rel (!%p38_p13) target bundleno = 19 (0x13), region = 197 }
 0xe78   : > { %s3830_s25 = smov %s3828_s17 }
 0xe7c   :  { %1719 = vsyncpa [#allocation4], 1 }
 0xe7d   :  { %1721 = vsyncpa [#allocation4 + $0x1], 1 }
 0xe7e   :  { %1722 = vsyncpa [#allocation7], 1 }
 0xe7f   :  { %1723 = vsyncpa [#allocation10], 1 }
 0xe80   :  { %1724 = vsyncpa [#allocation13], 1 }
 0xe81   :  { %1725 = vsyncpa [#allocation16], 1 }
 0xe82   :  { %1726 = vsyncpa [#allocation19], 1 }
 0xe83   :  { %1727 = vsyncpa [#allocation22], 1 }
 0xe84   :  { %1728 = vsyncpa [#allocation25], 1 }
 0xe85   :  { %1729 = vsyncpa [#allocation28], 1 }
 0xe86   :  { %1730 = vsyncpa [#allocation5], 1 }
 0xe87   :  { %1732 = vsyncpa [#allocation5 + $0x1], 1 }

</bundles_post_ra>
